<compile_context>
chip_gen: v7x
topology: tpu7x:2x2x1
jax: 0.10.0
libtpu: 0.0.40
codegen_flags: <defaults>
</compile_context>

<pallas_src>
import functools

import jax
import jax.numpy as jnp
from jax.experimental import pallas as pl
from jax.experimental.pallas import tpu as pltpu


# ----------------------------------------------------------------------------
# Fused kernel: per grid step (Bt samples)
#   avgpool -> conv1 (1x1) -> BN -> ReLU -> conv2 (1x1, ONE stacked matmul)
#   depthwise conv: per tap, lane-roll flattened spatial axis + mask + FMA
# ----------------------------------------------------------------------------
def _dyn_dwconv_kernel(x_ref, w1_ref, w2_ref, scale_ref, shift_ref, mask_ref,
                       o_ref, *, K, W, pad, inv_s):
    # x_ref    : (Bt, C, S_pad)   input, S_pad = pad128(H*W), NCHW, spatial flattened
    # w1_ref   : (Cr, C)          conv1 weight (transposed)
    # w2_ref   : (K*K*C, Cr)      conv2 weight, row index = kk*C + c
    # scale_ref, shift_ref : (Cr, 1)   folded BatchNorm (inference form)
    # mask_ref : (K*K, 1, S_pad)  {0,1} boundary masks per tap (zero over the pad)
    # o_ref    : (Bt, C, S_pad)
    Bt, C, S_pad = x_ref.shape

    for b in range(Bt):                                    # static unroll (Bt small)
        xv = x_ref[b]                                      # (C, S_pad), caller dtype
        # ---- dynamic weight generation (data already in VMEM) ---------------
        pooled = jnp.sum(xv.astype(jnp.float32), axis=1, keepdims=True) * inv_s  # (C,1)
        hid = jnp.dot(w1_ref[...], pooled,
                      preferred_element_type=jnp.float32)                        # (Cr,1)
        hid = jnp.maximum(hid * scale_ref[...] + shift_ref[...], 0.0)            # BN+ReLU
        # ALL tap weights in one matmul (hoisted out of the tap loop).
        taps = jnp.dot(w2_ref[...], hid,
                       preferred_element_type=jnp.float32)                       # (K*K*C,1)

        # ---- depthwise conv: one XLU lane-roll + mask + FMA per tap ---------
        acc = jnp.zeros((C, S_pad), jnp.float32)           # f32 accumulator (vregs)
        for kh in range(K):
            for kw in range(K):
                kk = kh * K + kw
                wk = taps[kk * C:(kk + 1) * C, :]           # (C,1) static sublane slice
                d = (kh - pad) * W + (kw - pad)             # flat spatial offset of tap
                if d == 0:
                    acc = acc + xv.astype(jnp.float32) * wk     # centre tap: mask == 1
                else:
                    xs = pltpu.roll(xv, (-d) % S_pad, axis=1)   # lane rotation (XLU)
                    # mask multiply stays in caller dtype ({0,1} -> exact), upcast
                    # only at the FMA into the f32 accumulator.
                    acc = acc + (xs * mask_ref[kk]).astype(jnp.float32) * wk
        o_ref[b] = acc.astype(o_ref.dtype)


# ----------------------------------------------------------------------------
# Wrapper
# ----------------------------------------------------------------------------
def dynamic_dw_conv(x_nchw, w1, w2, bn_gamma, bn_beta, bn_mean, bn_var, *,
                    kernel_size, stride=1, padding=1, eps=1e-5, bias=None):
    B, C, H, W = x_nchw.shape
    K = kernel_size
    if stride != 1:
        # TODO(synk): general stride needs strided output indexing; Bottle2neck(64,1,2) uses stride=1.
        raise NotImplementedError("only stride=1 is implemented")
    if 2 * padding != K - 1:
        # TODO(synk): DynamicDWConv inside Bottle2neck always uses 'same' padding (pad=(K-1)//2).
        raise NotImplementedError("only 'same' padding (2*padding == K-1) is implemented")
    Cr = w1.shape[1]
    S = H * W
    S_pad = ((S + 127) // 128) * 128           # lane-dense output blocks (multiple of 128)

    # Fold BatchNorm running stats into scale/shift (inference semantics).
    inv_std = 1.0 / jnp.sqrt(bn_var.astype(jnp.float32) + eps)
    scale = (bn_gamma * inv_std).reshape(Cr, 1).astype(jnp.float32)
    shift = (bn_beta - bn_mean * bn_gamma * inv_std).reshape(Cr, 1).astype(jnp.float32)

    # One-time weight re-layouts (would live at module init in a real model).
    w1t = jnp.asarray(w1, jnp.float32).T                                          # (Cr, C)
    # (Cr, C*K*K) -> (K*K*C, Cr) with row index kk*C + c  (single stacked matmul operand)
    w2flat = (jnp.asarray(w2, jnp.float32)
              .reshape(Cr, C, K * K).transpose(2, 1, 0).reshape(K * K * C, Cr))

    # Static {0,1} boundary masks over the flattened spatial axis, one per tap,
    # zero-extended over the lane-padding region.  Stored in the caller dtype.
    hh = jnp.arange(H)[:, None]
    ww = jnp.arange(W)[None, :]
    masks = []
    for kh in range(K):
        for kw in range(K):
            dh, dw = kh - padding, kw - padding
            m = (hh + dh >= 0) & (hh + dh < H) & (ww + dw >= 0) & (ww + dw < W)
            masks.append(m.reshape(1, S))
    mask = jnp.stack(masks).astype(x_nchw.dtype)                                  # (K*K, 1, S)
    if S_pad > S:
        mask = jnp.pad(mask, ((0, 0), (0, 0), (0, S_pad - S)))

    # Flatten spatial (free, stays NCHW-contiguous) and pad lanes with zeros
    # (zeros keep the pooled mean exact since we divide by the true H*W).
    x_flat = x_nchw.reshape(B, C, S)
    if S_pad > S:
        x_flat = jnp.pad(x_flat, ((0, 0), (0, 0), (0, S_pad - S)))

    # Batch-block sizing: keep >=2 grid steps when B>=2 (v7x has 2 TensorCores)
    # while making per-step blocks as large as a conservative VMEM budget allows
    # (amortizes the ~600-cycle per-grid-step overhead).
    itemsize = x_flat.dtype.itemsize
    bytes_per_sample = C * S_pad * itemsize
    vmem_block_budget = 8 * 1024 * 1024                    # per block; x4 w/ double buffering
    bt_budget = max(1, vmem_block_budget // max(1, bytes_per_sample))
    bt_cores = max(1, B // 2)
    Bt = int(max(1, min(B, bt_budget, bt_cores)))
    B_pad = ((B + Bt - 1) // Bt) * Bt
    if B_pad > B:
        x_flat = jnp.pad(x_flat, ((0, B_pad - B), (0, 0), (0, 0)))
    n_steps = B_pad // Bt

    # VMEM limit derived from actual block sizes (v7x only has 64 MiB physical).
    block_bytes = Bt * C * S_pad * itemsize
    resident_bytes = (K * K * C * Cr + Cr * C + 2 * Cr) * 4 + K * K * S_pad * itemsize
    vmem_est = 4 * block_bytes + resident_bytes            # double-buffered in + out
    vmem_limit = int(min(64 * 1024 * 1024, max(32 * 1024 * 1024, 2 * vmem_est)))

    out_flat = pl.pallas_call(
        functools.partial(_dyn_dwconv_kernel, K=K, W=W, pad=padding, inv_s=1.0 / S),
        out_shape=jax.ShapeDtypeStruct((B_pad, C, S_pad), x_nchw.dtype),
        grid=(n_steps,),
        in_specs=[
            pl.BlockSpec((Bt, C, S_pad), lambda g: (g, 0, 0)),       # x (streamed)
            pl.BlockSpec((Cr, C), lambda g: (0, 0)),                 # conv1 weight (resident)
            pl.BlockSpec((K * K * C, Cr), lambda g: (0, 0)),         # conv2 weight slab (resident)
            pl.BlockSpec((Cr, 1), lambda g: (0, 0)),                 # BN scale
            pl.BlockSpec((Cr, 1), lambda g: (0, 0)),                 # BN shift
            pl.BlockSpec((K * K, 1, S_pad), lambda g: (0, 0, 0)),    # boundary masks
        ],
        out_specs=pl.BlockSpec((Bt, C, S_pad), lambda g: (g, 0, 0)),
        compiler_params=pltpu.CompilerParams(
            dimension_semantics=("parallel",),
            vmem_limit_bytes=vmem_limit),
    )(x_flat, w1t, w2flat, scale, shift, mask)

    out = out_flat[:B, :, :S].reshape(B, C, H, W)
    if bias is not None:
        out = out + bias.reshape(1, C, 1, 1).astype(out.dtype)
    return out


# ----------------------------------------------------------------------------
# Pure-JAX reference (same math, NCHW) for verification
# ----------------------------------------------------------------------------
def _reference(x, w1, w2, gamma, beta, mean, var, K, stride, pad, eps=1e-5):
    b, c, h, w = x.shape
    pooled = jnp.mean(x, axis=(2, 3))
    hid = pooled @ w1
    hid = (hid - mean) / jnp.sqrt(var + eps) * gamma + beta
    hid = jnp.maximum(hid, 0.0)
    wdyn = (hid @ w2).reshape(b, c, K, K)
    xp = jnp.pad(x, ((0, 0), (0, 0), (pad, pad), (pad, pad)))
    Ho = (h + 2 * pad - K) // stride + 1
    Wo = (w + 2 * pad - K) // stride + 1
    out = jnp.zeros((b, c, Ho, Wo), jnp.float32)
    for kh in range(K):
        for kw in range(K):
            out = out + xp[:, :, kh:kh + Ho, kw:kw + Wo] * wdyn[:, :, kh, kw][:, :, None, None]
    return out


def _run_case(key, B, C, H, W, K, pad, reduction=4, dtype=jnp.float32):
    Cr = C // reduction
    kx, k1, k2, kg, kb, km, kv = jax.random.split(key, 7)
    x = jax.random.normal(kx, (B, C, H, W), jnp.float32)
    # conv1 weight (C -> Cr), conv2 weight (Cr -> C*K*K); 1x1, bias-free
    w1 = 0.1 * jax.random.normal(k1, (C, Cr), jnp.float32)
    w2 = 0.1 * jax.random.normal(k2, (Cr, C * K * K), jnp.float32)
    # BatchNorm2d(Cr) parameters / running stats
    gamma = 1.0 + 0.1 * jax.random.normal(kg, (Cr,), jnp.float32)
    beta = 0.1 * jax.random.normal(kb, (Cr,), jnp.float32)
    mean = 0.1 * jax.random.normal(km, (Cr,), jnp.float32)
    var = 1.0 + 0.1 * jax.random.uniform(kv, (Cr,), jnp.float32)

    x_in = x.astype(dtype)
    out = dynamic_dw_conv(x_in, w1, w2, gamma, beta, mean, var,
                          kernel_size=K, stride=1, padding=pad)
    out = jax.block_until_ready(out)
    assert out.dtype == dtype

    ref = _reference(x_in.astype(jnp.float32), w1, w2, gamma, beta, mean, var, K, 1, pad)
    assert out.shape == ref.shape == (B, C, H, W)
    tol = 1e-3 if dtype == jnp.float32 else 3e-2
    err = float(jnp.max(jnp.abs(out.astype(jnp.float32) - ref)))
    assert jnp.allclose(out.astype(jnp.float32), ref, atol=tol, rtol=tol), err


if __name__ == "__main__":
    k1, k2, k3 = jax.random.split(jax.random.PRNGKey(0), 3)
    # Bottle2neck(64, 1, 2) on a (2, 64, 12, 12) input splits channels into [32, 32]
    # and applies DynamicDWConv(32, K=3, pad=1) and DynamicDWConv(32, K=5, pad=2).
    _run_case(k1, B=2, C=32, H=12, W=12, K=3, pad=1)
    _run_case(k2, B=2, C=32, H=12, W=12, K=5, pad=2)
    # bf16 streaming path (v6e/v7x): bf16 rolls/masks, f32 accumulation.
    _run_case(k3, B=2, C=32, H=12, W=12, K=3, pad=1, dtype=jnp.bfloat16)
    print("KERNEL_OK")
</pallas_src>

<mosaic_0001>
module attributes {stable_mosaic.version = 11 : i64} {
  func.func @_dyn_dwconv_kernel(%arg0: i32, %arg1: memref<1x32x256xf32, #tpu.memory_space<vmem>>, %arg2: memref<8x32xf32, #tpu.memory_space<vmem>>, %arg3: memref<288x8xf32, #tpu.memory_space<vmem>>, %arg4: memref<8x1xf32, #tpu.memory_space<vmem>>, %arg5: memref<8x1xf32, #tpu.memory_space<vmem>>, %arg6: memref<9x1x256xf32, #tpu.memory_space<vmem>>, %arg7: memref<1x32x256xf32, #tpu.memory_space<vmem>>) attributes {dimension_semantics = [#tpu.dimension_semantics<parallel>], iteration_bounds = array<i64: 2>, scalar_prefetch = 0 : i64, scratch_operands = 0 : i64, tpu.core_type = #tpu.core_type<tc>, window_params = [{transform_indices = @transform_0, window_bounds = array<i64: 1, 32, 256>}, {pipeline_mode = #tpu.pipeline_mode<synchronous>, transform_indices = @transform_1, window_bounds = array<i64: 8, 32>}, {pipeline_mode = #tpu.pipeline_mode<synchronous>, transform_indices = @transform_2, window_bounds = array<i64: 288, 8>}, {pipeline_mode = #tpu.pipeline_mode<synchronous>, transform_indices = @transform_3, window_bounds = array<i64: 8, 1>}, {pipeline_mode = #tpu.pipeline_mode<synchronous>, transform_indices = @transform_4, window_bounds = array<i64: 8, 1>}, {pipeline_mode = #tpu.pipeline_mode<synchronous>, transform_indices = @transform_5, window_bounds = array<i64: 9, 1, 256>}, {transform_indices = @transform_6, window_bounds = array<i64: 1, 32, 256>}]} {
    %c0 = arith.constant 0 : index
    %c0_0 = arith.constant 0 : index
    %c0_1 = arith.constant 0 : index
    %0 = vector.load %arg1[%c0, %c0_0, %c0_1] : memref<1x32x256xf32, #tpu.memory_space<vmem>>, vector<1x32x256xf32>
    %1 = vector.shape_cast %0 : vector<1x32x256xf32> to vector<32x256xf32>
    %cst = arith.constant dense<0.000000e+00> : vector<32xf32>
    %2 = vector.multi_reduction <add>, %1, %cst [1] : vector<32x256xf32> to vector<32xf32>
    %3 = vector.shape_cast %2 : vector<32xf32> to vector<32x1xf32>
    %cst_2 = arith.constant 0.0069444445 : f32
    %4 = vector.broadcast %cst_2 : f32 to vector<32x1xf32>
    %5 = arith.mulf %3, %4 : vector<32x1xf32>
    %c0_3 = arith.constant 0 : index
    %c0_4 = arith.constant 0 : index
    %6 = vector.load %arg2[%c0_3, %c0_4] : memref<8x32xf32, #tpu.memory_space<vmem>>, vector<8x32xf32>
    %cst_5 = arith.constant dense<0.000000e+00> : vector<8x1xf32>
    %7 = tpu.matmul %6, %5, %cst_5 {dimension_numbers = #tpu.dot_dimension_numbers<[1], [0], [0], [1], [0, 0, 1, 1], [], []>} : vector<8x32xf32>, vector<32x1xf32>, vector<8x1xf32> -> vector<8x1xf32>
    %c0_6 = arith.constant 0 : index
    %c0_7 = arith.constant 0 : index
    %8 = vector.load %arg4[%c0_6, %c0_7] : memref<8x1xf32, #tpu.memory_space<vmem>>, vector<8x1xf32>
    %9 = arith.mulf %7, %8 : vector<8x1xf32>
    %c0_8 = arith.constant 0 : index
    %c0_9 = arith.constant 0 : index
    %10 = vector.load %arg5[%c0_8, %c0_9] : memref<8x1xf32, #tpu.memory_space<vmem>>, vector<8x1xf32>
    %11 = arith.addf %9, %10 : vector<8x1xf32>
    %cst_10 = arith.constant 0.000000e+00 : f32
    %12 = vector.broadcast %cst_10 : f32 to vector<8x1xf32>
    %13 = arith.maximumf %11, %12 : vector<8x1xf32>
    %c0_11 = arith.constant 0 : index
    %c0_12 = arith.constant 0 : index
    %14 = vector.load %arg3[%c0_11, %c0_12] : memref<288x8xf32, #tpu.memory_space<vmem>>, vector<288x8xf32>
    %cst_13 = arith.constant dense<0.000000e+00> : vector<288x1xf32>
    %15 = tpu.matmul %14, %13, %cst_13 {dimension_numbers = #tpu.dot_dimension_numbers<[1], [0], [0], [1], [0, 0, 1, 1], [], []>} : vector<288x8xf32>, vector<8x1xf32>, vector<288x1xf32> -> vector<288x1xf32>
    %cst_14 = arith.constant 0.000000e+00 : f32
    %16 = vector.broadcast %cst_14 : f32 to vector<32x256xf32>
    %17 = vector.extract_strided_slice %15 {offsets = [0, 0], sizes = [32, 1], strides = [1, 1]} : vector<288x1xf32> to vector<32x1xf32>
    %c13_i32 = arith.constant 13 : i32
    %18 = tpu.dynamic_rotate %1 by %c13_i32 dim 1 : vector<32x256xf32>, i32 -> vector<32x256xf32>
    %c0_15 = arith.constant 0 : index
    %c0_16 = arith.constant 0 : index
    %c0_17 = arith.constant 0 : index
    %19 = vector.load %arg6[%c0_15, %c0_16, %c0_17] : memref<9x1x256xf32, #tpu.memory_space<vmem>>, vector<1x1x256xf32>
    %20 = vector.shape_cast %19 : vector<1x1x256xf32> to vector<1x256xf32>
    %21 = vector.broadcast %20 : vector<1x256xf32> to vector<32x256xf32>
    %22 = arith.mulf %18, %21 : vector<32x256xf32>
    %23 = vector.broadcast %17 : vector<32x1xf32> to vector<32x256xf32>
    %24 = arith.mulf %22, %23 : vector<32x256xf32>
    %25 = arith.addf %16, %24 : vector<32x256xf32>
    %26 = vector.extract_strided_slice %15 {offsets = [32, 0], sizes = [32, 1], strides = [1, 1]} : vector<288x1xf32> to vector<32x1xf32>
    %c12_i32 = arith.constant 12 : i32
    %27 = tpu.dynamic_rotate %1 by %c12_i32 dim 1 : vector<32x256xf32>, i32 -> vector<32x256xf32>
    %c1 = arith.constant 1 : index
    %c0_18 = arith.constant 0 : index
    %c0_19 = arith.constant 0 : index
    %28 = vector.load %arg6[%c1, %c0_18, %c0_19] : memref<9x1x256xf32, #tpu.memory_space<vmem>>, vector<1x1x256xf32>
    %29 = vector.shape_cast %28 : vector<1x1x256xf32> to vector<1x256xf32>
    %30 = vector.broadcast %29 : vector<1x256xf32> to vector<32x256xf32>
    %31 = arith.mulf %27, %30 : vector<32x256xf32>
    %32 = vector.broadcast %26 : vector<32x1xf32> to vector<32x256xf32>
    %33 = arith.mulf %31, %32 : vector<32x256xf32>
    %34 = arith.addf %25, %33 : vector<32x256xf32>
    %35 = vector.extract_strided_slice %15 {offsets = [64, 0], sizes = [32, 1], strides = [1, 1]} : vector<288x1xf32> to vector<32x1xf32>
    %c11_i32 = arith.constant 11 : i32
    %36 = tpu.dynamic_rotate %1 by %c11_i32 dim 1 : vector<32x256xf32>, i32 -> vector<32x256xf32>
    %c2 = arith.constant 2 : index
    %c0_20 = arith.constant 0 : index
    %c0_21 = arith.constant 0 : index
    %37 = vector.load %arg6[%c2, %c0_20, %c0_21] : memref<9x1x256xf32, #tpu.memory_space<vmem>>, vector<1x1x256xf32>
    %38 = vector.shape_cast %37 : vector<1x1x256xf32> to vector<1x256xf32>
    %39 = vector.broadcast %38 : vector<1x256xf32> to vector<32x256xf32>
    %40 = arith.mulf %36, %39 : vector<32x256xf32>
    %41 = vector.broadcast %35 : vector<32x1xf32> to vector<32x256xf32>
    %42 = arith.mulf %40, %41 : vector<32x256xf32>
    %43 = arith.addf %34, %42 : vector<32x256xf32>
    %44 = vector.extract_strided_slice %15 {offsets = [96, 0], sizes = [32, 1], strides = [1, 1]} : vector<288x1xf32> to vector<32x1xf32>
    %c1_i32 = arith.constant 1 : i32
    %45 = tpu.dynamic_rotate %1 by %c1_i32 dim 1 : vector<32x256xf32>, i32 -> vector<32x256xf32>
    %c3 = arith.constant 3 : index
    %c0_22 = arith.constant 0 : index
    %c0_23 = arith.constant 0 : index
    %46 = vector.load %arg6[%c3, %c0_22, %c0_23] : memref<9x1x256xf32, #tpu.memory_space<vmem>>, vector<1x1x256xf32>
    %47 = vector.shape_cast %46 : vector<1x1x256xf32> to vector<1x256xf32>
    %48 = vector.broadcast %47 : vector<1x256xf32> to vector<32x256xf32>
    %49 = arith.mulf %45, %48 : vector<32x256xf32>
    %50 = vector.broadcast %44 : vector<32x1xf32> to vector<32x256xf32>
    %51 = arith.mulf %49, %50 : vector<32x256xf32>
    %52 = arith.addf %43, %51 : vector<32x256xf32>
    %53 = vector.extract_strided_slice %15 {offsets = [128, 0], sizes = [32, 1], strides = [1, 1]} : vector<288x1xf32> to vector<32x1xf32>
    %54 = vector.broadcast %53 : vector<32x1xf32> to vector<32x256xf32>
    %55 = arith.mulf %1, %54 : vector<32x256xf32>
    %56 = arith.addf %52, %55 : vector<32x256xf32>
    %57 = vector.extract_strided_slice %15 {offsets = [160, 0], sizes = [32, 1], strides = [1, 1]} : vector<288x1xf32> to vector<32x1xf32>
    %c255_i32 = arith.constant 255 : i32
    %58 = tpu.dynamic_rotate %1 by %c255_i32 dim 1 : vector<32x256xf32>, i32 -> vector<32x256xf32>
    %c5 = arith.constant 5 : index
    %c0_24 = arith.constant 0 : index
    %c0_25 = arith.constant 0 : index
    %59 = vector.load %arg6[%c5, %c0_24, %c0_25] : memref<9x1x256xf32, #tpu.memory_space<vmem>>, vector<1x1x256xf32>
    %60 = vector.shape_cast %59 : vector<1x1x256xf32> to vector<1x256xf32>
    %61 = vector.broadcast %60 : vector<1x256xf32> to vector<32x256xf32>
    %62 = arith.mulf %58, %61 : vector<32x256xf32>
    %63 = vector.broadcast %57 : vector<32x1xf32> to vector<32x256xf32>
    %64 = arith.mulf %62, %63 : vector<32x256xf32>
    %65 = arith.addf %56, %64 : vector<32x256xf32>
    %66 = vector.extract_strided_slice %15 {offsets = [192, 0], sizes = [32, 1], strides = [1, 1]} : vector<288x1xf32> to vector<32x1xf32>
    %c245_i32 = arith.constant 245 : i32
    %67 = tpu.dynamic_rotate %1 by %c245_i32 dim 1 : vector<32x256xf32>, i32 -> vector<32x256xf32>
    %c6 = arith.constant 6 : index
    %c0_26 = arith.constant 0 : index
    %c0_27 = arith.constant 0 : index
    %68 = vector.load %arg6[%c6, %c0_26, %c0_27] : memref<9x1x256xf32, #tpu.memory_space<vmem>>, vector<1x1x256xf32>
    %69 = vector.shape_cast %68 : vector<1x1x256xf32> to vector<1x256xf32>
    %70 = vector.broadcast %69 : vector<1x256xf32> to vector<32x256xf32>
    %71 = arith.mulf %67, %70 : vector<32x256xf32>
    %72 = vector.broadcast %66 : vector<32x1xf32> to vector<32x256xf32>
    %73 = arith.mulf %71, %72 : vector<32x256xf32>
    %74 = arith.addf %65, %73 : vector<32x256xf32>
    %75 = vector.extract_strided_slice %15 {offsets = [224, 0], sizes = [32, 1], strides = [1, 1]} : vector<288x1xf32> to vector<32x1xf32>
    %c244_i32 = arith.constant 244 : i32
    %76 = tpu.dynamic_rotate %1 by %c244_i32 dim 1 : vector<32x256xf32>, i32 -> vector<32x256xf32>
    %c7 = arith.constant 7 : index
    %c0_28 = arith.constant 0 : index
    %c0_29 = arith.constant 0 : index
    %77 = vector.load %arg6[%c7, %c0_28, %c0_29] : memref<9x1x256xf32, #tpu.memory_space<vmem>>, vector<1x1x256xf32>
    %78 = vector.shape_cast %77 : vector<1x1x256xf32> to vector<1x256xf32>
    %79 = vector.broadcast %78 : vector<1x256xf32> to vector<32x256xf32>
    %80 = arith.mulf %76, %79 : vector<32x256xf32>
    %81 = vector.broadcast %75 : vector<32x1xf32> to vector<32x256xf32>
    %82 = arith.mulf %80, %81 : vector<32x256xf32>
    %83 = arith.addf %74, %82 : vector<32x256xf32>
    %84 = vector.extract_strided_slice %15 {offsets = [256, 0], sizes = [32, 1], strides = [1, 1]} : vector<288x1xf32> to vector<32x1xf32>
    %c243_i32 = arith.constant 243 : i32
    %85 = tpu.dynamic_rotate %1 by %c243_i32 dim 1 : vector<32x256xf32>, i32 -> vector<32x256xf32>
    %c8 = arith.constant 8 : index
    %c0_30 = arith.constant 0 : index
    %c0_31 = arith.constant 0 : index
    %86 = vector.load %arg6[%c8, %c0_30, %c0_31] : memref<9x1x256xf32, #tpu.memory_space<vmem>>, vector<1x1x256xf32>
    %87 = vector.shape_cast %86 : vector<1x1x256xf32> to vector<1x256xf32>
    %88 = vector.broadcast %87 : vector<1x256xf32> to vector<32x256xf32>
    %89 = arith.mulf %85, %88 : vector<32x256xf32>
    %90 = vector.broadcast %84 : vector<32x1xf32> to vector<32x256xf32>
    %91 = arith.mulf %89, %90 : vector<32x256xf32>
    %92 = arith.addf %83, %91 : vector<32x256xf32>
    %c0_32 = arith.constant 0 : index
    %c0_33 = arith.constant 0 : index
    %c0_34 = arith.constant 0 : index
    %93 = vector.load %arg7[%c0_32, %c0_33, %c0_34] : memref<1x32x256xf32, #tpu.memory_space<vmem>>, vector<1x32x256xf32>
    %94 = vector.shape_cast %93 : vector<1x32x256xf32> to vector<32x256xf32>
    %95 = vector.shape_cast %92 : vector<32x256xf32> to vector<1x32x256xf32>
    tpu.vector_store %arg7[%c0_32, %c0_33, %c0_34], %95 {strides = array<i32>} : memref<1x32x256xf32, #tpu.memory_space<vmem>>, vector<1x32x256xf32>,
    return
  }
  func.func @transform_0(%arg0: i32) -> (i32, i32, i32) {
    %c0_i32 = arith.constant 0 : i32
    %c0_i32_0 = arith.constant 0 : i32
    %c0_i32_1 = arith.constant 0 : i32
    return %arg0, %c0_i32, %c0_i32_0 : i32, i32, i32
  }
  func.func @transform_1(%arg0: i32) -> (i32, i32) {
    %c0_i32 = arith.constant 0 : i32
    %c0_i32_0 = arith.constant 0 : i32
    %c0_i32_1 = arith.constant 0 : i32
    return %c0_i32, %c0_i32_0 : i32, i32
  }
  func.func @transform_2(%arg0: i32) -> (i32, i32) {
    %c0_i32 = arith.constant 0 : i32
    %c0_i32_0 = arith.constant 0 : i32
    %c0_i32_1 = arith.constant 0 : i32
    return %c0_i32, %c0_i32_0 : i32, i32
  }
  func.func @transform_3(%arg0: i32) -> (i32, i32) {
    %c0_i32 = arith.constant 0 : i32
    %c0_i32_0 = arith.constant 0 : i32
    %c0_i32_1 = arith.constant 0 : i32
    return %c0_i32, %c0_i32_0 : i32, i32
  }
  func.func @transform_4(%arg0: i32) -> (i32, i32) {
    %c0_i32 = arith.constant 0 : i32
    %c0_i32_0 = arith.constant 0 : i32
    %c0_i32_1 = arith.constant 0 : i32
    return %c0_i32, %c0_i32_0 : i32, i32
  }
  func.func @transform_5(%arg0: i32) -> (i32, i32, i32) {
    %c0_i32 = arith.constant 0 : i32
    %c0_i32_0 = arith.constant 0 : i32
    %c0_i32_1 = arith.constant 0 : i32
    %c0_i32_2 = arith.constant 0 : i32
    return %c0_i32, %c0_i32_0, %c0_i32_1 : i32, i32, i32
  }
  func.func @transform_6(%arg0: i32) -> (i32, i32, i32) {
    %c0_i32 = arith.constant 0 : i32
    %c0_i32_0 = arith.constant 0 : i32
    %c0_i32_1 = arith.constant 0 : i32
    return %arg0, %c0_i32, %c0_i32_0 : i32, i32, i32
  }
}

</mosaic_0001>

<bundles_post_ra>
// kernel: tpu_custom_call.1
= control target key start
LH: loop header
LB: loop body
LE: loop exit
PB: predicated region body
PF: predicated region fallthrough
CT: control target
= control target key end

     0   :  { %11 = vsyncpa [#allocation3], 0  ;;  %s2727_s0 = inlined_call_operand.vmem [shape: f32[2,32,256], index: 0, kind: input, shape index: {}]   ;;  %s2728_s1 = inlined_call_operand.vmem [shape: f32[8,32], index: 1, kind: input, shape index: {}]   ;;  %s2729_s2 = inlined_call_operand.vmem [shape: f32[288,8], index: 2, kind: input, shape index: {}]   ;;  %s2730_s3 = inlined_call_operand.vmem [shape: f32[8,1], index: 3, kind: input, shape index: {}]   ;;  %s2731_s4 = inlined_call_operand.vmem [shape: f32[8,1], index: 4, kind: input, shape index: {}]   ;;  %s2732_s5 = inlined_call_operand.vmem [shape: f32[9,1,256], index: 5, kind: input, shape index: {}]   ;;  %s2733_s6 = inlined_call_operand.hbm [shape: f32[2,32,256], index: 6, kind: output, shape index: {}]  }
   0x1   :  { %13 = vsyncpa [#allocation3 + $0x1], 0  ;;  %s1873_s21 = smov 0   ;;  %s1875_s22 = smov 0  }
   0x2   :  { %s1877_s23 = smov 0   ;;  %s1879_s24 = smov 0  }
   0x3 LB: > { %s1894_s25 = sadd.s32 4294967295, %s1821_s24   ;;  %s1521_s26 = sadd.s32 4294967294, %s1821_s24   ;;  %s1821_s24 = sphi %s1879_s24, %s2815_s24   ;;  %s1817_s23 = sphi %s1877_s23, %s2814_s23   ;;  %s1813_s22 = sphi %s1875_s22, %s2813_s22   ;;  %s1809_s21 = sphi %s1873_s21, %s2812_s21  }
   0x4   : > { %s1898_s27 = sadd.s32 1, %s1821_s24   ;;  %s157_s28 = sadd.s32 1, %s1817_s23 }
   0x5   : > { %s154_s29 = ssub.s32 %s1821_s24, %s1898_s27  ;;  %p167_p0 = scmp.ne.s32.totalorder %s1817_s23, %s1813_s22 }
   0x6   : > { %p155_p1 = scmp.eq.s32.totalorder %s154_s29, 0  ;;  %p168_p2 = scmp.eq.s32.totalorder %s1894_s25, 1 }
   0x7   : > { %p173_p3 = scmp.ne.s32.totalorder %s1813_s22, %s1809_s21  ;;  %p174_p4 = scmp.eq.s32.totalorder %s1521_s26, 1 }
   0x8   : > { %s1909_s30 = scalar_select %p155_p1, %s1817_s23, %s157_s28  }
   0x9   : > { %p1911_p5 = por %p168_p2, %p167_p0  ;;  %p1915_p6 = por %p174_p4, %p173_p3 }
   0xa   : > { %p1524_p7 = scmp.ge.s32.totalorder %s1821_s24, 1  ;;  %p215_p8 = scmp.lt.s32.totalorder %s1821_s24, 3 }
   0xc   : > { %p216_p9 = pnand %p1524_p7, %p215_p8 }
   0xe   : > { %219 = sbr.rel (%p216_p9) target bundleno = 843 (0x34b), region = 44 }
  0x15   : > { %p245_p10 = scmp.lt.s32.totalorder %s1894_s25, 1  ;;  %v1823_v12 = vmov 0.0|0.0   ;;  %vm1824_vm0 = vmmov 0   ;;  %v1825_v13 = vmov 0.0   ;;  %v274_v24 = vld [vmem:[%s2728_s1] sm:$0xff]  ;;  %vm275_vm1 = vcmask 261120  }
  0x16   : > { %1688 = vmatprep.subr.bf16.mxu0 %v1823_v12  ;;  %1629 = vmatprep.mubr.msk.f32.mxu0 %vm1824_vm0, %v1825_v13  ;;  %v354_v25 = vld [vmem:[%s2729_s2] sm:$0xff]  ;;  %vm390_vm2 = vcmask 64512   ;;  %v368_v26 = vld [vmem:[%s2729_s2 + $0x70] sm:$0xff]  ;;  %s1826_s20 = smov 13   ;;  %v1827_v27 = vmov 0   ;;  %s1828_s26 = smov 12   ;;  %v2734_v63 = vlaneseq }
  0x17   : > { %s246_s9 = scalar_select %p245_p10, %s1894_s25, 1  ;;  %1655 = vmatprep.mubr.msk.f32.mxu1 %vm390_vm2, %v368_v26  ;;  %1750 = vset.pattern.permute.xlu0 %v1827_v27  ;;  %v349_v28 = vld [vmem:[%s2730_s3] sm:$0xff]  ;;  %v355_v35 = vld [vmem:[%s2729_s2 + $0x8] sm:$0xff]  ;;  %v369_v36 = vld [vmem:[%s2729_s2 + $0x78] sm:$0xff] }
  0x18   : > { %1749 = vset.pattern.permute.xlu1 %v1827_v27  ;;  %s1829_s28 = smov 11   ;;  %s1830_s29 = smov 1   ;;  %v351_v30 = vld [vmem:[%s2731_s4] sm:$0xff]  ;;  %v356_v37 = vld [vmem:[%s2729_s2 + $0x10] sm:$0xff]  ;;  %v357_v39 = vld [vmem:[%s2729_s2 + $0x18] sm:$0xff] }
  0x19   : > { %s1577_s10 = sshll.u32 %s246_s9, 6  ;;  %s1831_s9 = smov 127   ;;  %v370_v38 = vld [vmem:[%s2729_s2 + $0x80] sm:$0xff]  ;;  %v371_v40 = vld [vmem:[%s2729_s2 + $0x88] sm:$0xff]  ;;  %v372_v42 = vld [vmem:[%s2729_s2 + $0x90] sm:$0xff] }
  0x1a   : > { %s1926_s13 = scalar_lea.vmem %s2727_s0, %s1577_s10  ;;  %s1832_s12 = smov 117   ;;  %v358_v41 = vld [vmem:[%s2729_s2 + $0x20] sm:$0xff]  ;;  %v359_v43 = vld [vmem:[%s2729_s2 + $0x28] sm:$0xff]  ;;  %v373_v44 = vld [vmem:[%s2729_s2 + $0x98] sm:$0xff] }
  0x1b   : > { %v1929_v0 = vld [vmem:[%s1926_s13 + $0x20] sm:$0xff]  ;;  %v1932_v1 = vld [vmem:[%s1926_s13 + $0x28] sm:$0xff]  ;;  %v1943_v5 = vld [vmem:[%s1926_s13 + $0x30] sm:$0xff]  ;;  %s1833_s14 = smov 116   ;;  %s1834_s19 = smov 115  }
  0x1c   : > { %v1935_v2 = vld [vmem:[%s1926_s13] sm:$0xff]  ;;  %v264_v3 = vadd.f32 %v1932_v1, %v1929_v0  ;;  %v1940_v4 = vld [vmem:[%s1926_s13 + $0x8] sm:$0xff]  ;;  %v1946_v6 = vld [vmem:[%s1926_s13 + $0x38] sm:$0xff]  ;;  %s1835_s16 = smov [#allocation2]  }
  0x1d   : > { %v258_v7 = vadd.f32 %v1940_v4, %v1935_v2  ;;  %v1951_v8 = vld [vmem:[%s1926_s13 + $0x10] sm:$0xff]  ;;  %v1954_v9 = vld [vmem:[%s1926_s13 + $0x18] sm:$0xff]  ;;  %v267_v10 = vadd.f32 %v1946_v6, %v1943_v5  ;;  %v374_v46 = vld [vmem:[%s2729_s2 + $0xa0] sm:$0xff]  ;;  %s1763_s17 = sshll.u32 %s1835_s16, 4  ;;  %s1764_s17 = int_to_ptr.vmem [resolvable:$false] %s1763_s17 }
  0x1e   : > { %265 = vadd.xlane.f32.xlu1 %v264_v3  ;;  %v261_v11 = vadd.f32 %v1954_v9, %v1951_v8  ;;  %v360_v45 = vld [vmem:[%s2729_s2 + $0x30] sm:$0xff]  ;;  %v361_v47 = vld [vmem:[%s2729_s2 + $0x38] sm:$0xff]  ;;  %v375_v48 = vld [vmem:[%s2729_s2 + $0xa8] sm:$0xff]  ;;  %s1765_s18 = scalar_lea.vmem %s1764_s17, 2048 }
  0x1f   : > { %259 = vadd.xlane.f32.xlu0 %v258_v7  ;;  %v362_v49 = vld [vmem:[%s2729_s2 + $0x40] sm:$0xff]  ;;  %v376_v50 = vld [vmem:[%s2729_s2 + $0xb0] sm:$0xff]  ;;  %v363_v51 = vld [vmem:[%s2729_s2 + $0x48] sm:$0xff] }
  0x20   : > { %v377_v52 = vld [vmem:[%s2729_s2 + $0xb8] sm:$0xff]  ;;  %v364_v53 = vld [vmem:[%s2729_s2 + $0x50] sm:$0xff]  ;;  %v378_v54 = vld [vmem:[%s2729_s2 + $0xc0] sm:$0xff] }
  0x21   : > { %v365_v55 = vld [vmem:[%s2729_s2 + $0x58] sm:$0xff]  ;;  %v379_v56 = vld [vmem:[%s2729_s2 + $0xc8] sm:$0xff]  ;;  %v366_v57 = vld [vmem:[%s2729_s2 + $0x60] sm:$0xff] }
  0x22   : > { %268 = vadd.xlane.f32.xlu1 %v267_v10  ;;  %v380_v58 = vld [vmem:[%s2729_s2 + $0xd0] sm:$0xff]  ;;  %v367_v59 = vld [vmem:[%s2729_s2 + $0x68] sm:$0xff]  ;;  %v381_v60 = vld [vmem:[%s2729_s2 + $0xd8] sm:$0xff]  ;;  %v2170_v10 = vand.u32 127, %v2734_v63 }
  0x23   : > { %262 = vadd.xlane.f32.xlu0 %v261_v11  ;;  %v382_v61 = vld [vmem:[%s2729_s2 + $0xe0] sm:$0xff]  ;;  %v383_v62 = vld [vmem:[%s2729_s2 + $0xe8] sm:$0xff]  ;;  %v384_v3 = vld [vmem:[%s2729_s2 + $0xf0] sm:$0xff] }
  0x24   : > { %2745 = vst [vmem:[#allocation5_spill] sm:$0xff] %v2170_v10  ;;  %v385_v11 = vld [vmem:[%s2729_s2 + $0xf8] sm:$0xff]  ;;  %vm762_vm3 = vcmp.lt.s32.totalorder %v2170_v10, 13  ;;  %vm843_vm4 = vcmp.lt.s32.totalorder %v2170_v10, 12  ;;  %vm925_vm5 = vcmp.lt.s32.totalorder %v2170_v10, 11  ;;  %vm1007_vm6 = vcmp.lt.s32.totalorder %v2170_v10, 1 }
  0x25   : > { %vm1125_vm7 = vcmp.lt.s32.totalorder %v2170_v10, 127  ;;  %vm1207_vm8 = vcmp.lt.s32.totalorder %v2170_v10, 117  ;;  %vm1289_vm9 = vcmp.lt.s32.totalorder %v2170_v10, 116  ;;  %vm1371_vm10 = vcmp.lt.s32.totalorder %v2170_v10, 115  ;;  %v1752_v10 = vld [vmem:[%s1926_s13 + $0x8] sm:$0xff] }
  0x33   : > { %746 = vrot.lane.b32.xlu1 %v1951_v8, %s1826_s20 }
  0x37   : > { %748 = vrot.lane.b32.xlu1 %v1929_v0, %s1826_s20 }
  0x39   : > { %744 = vrot.lane.b32.xlu0 %v1935_v2, %s1826_s20 }
  0x3b   : > { %750 = vrot.lane.b32.xlu1 %v1943_v5, %s1826_s20 }
  0x3d   : > { %752 = vrot.lane.b32.xlu0 %v1940_v4, %s1826_s20 }
  0x3f   : > { %754 = vrot.lane.b32.xlu1 %v1954_v9, %s1826_s20 }
  0x41   : > { %756 = vrot.lane.b32.xlu0 %v1932_v1, %s1826_s20 }
  0x43   : > { %758 = vrot.lane.b32.xlu1 %v1946_v6, %s1826_s20 }
  0x45   : > { %829 = vrot.lane.b32.xlu0 %v1951_v8, %s1828_s26 }
  0x47   : > { %827 = vrot.lane.b32.xlu1 %v1935_v2, %s1828_s26 }
  0x49   : > { %833 = vrot.lane.b32.xlu0 %v1943_v5, %s1828_s26 }
  0x4b   : > { %831 = vrot.lane.b32.xlu1 %v1929_v0, %s1828_s26 }
  0x4d   : > { %837 = vrot.lane.b32.xlu0 %v1954_v9, %s1828_s26 }
  0x4f   : > { %835 = vrot.lane.b32.xlu1 %v1940_v4, %s1828_s26 }
  0x51   : > { %841 = vrot.lane.b32.xlu0 %v1946_v6, %s1828_s26 }
  0x53   : > { %839 = vrot.lane.b32.xlu1 %v1932_v1, %s1828_s26 }
  0x55   : > { %911 = vrot.lane.b32.xlu0 %v1951_v8, %s1829_s28 }
  0x57   : > { %909 = vrot.lane.b32.xlu1 %v1935_v2, %s1829_s28 }
  0x59   : > { %915 = vrot.lane.b32.xlu0 %v1943_v5, %s1829_s28 }
  0x5b   : > { %913 = vrot.lane.b32.xlu1 %v1929_v0, %s1829_s28 }
  0x5d   : > { %919 = vrot.lane.b32.xlu0 %v1954_v9, %s1829_s28 }
  0x5f   : > { %917 = vrot.lane.b32.xlu1 %v1940_v4, %s1829_s28 }
  0x61   : > { %923 = vrot.lane.b32.xlu0 %v1946_v6, %s1829_s28 }
  0x63   : > { %921 = vrot.lane.b32.xlu1 %v1932_v1, %s1829_s28 }
  0x65   : > { %993 = vrot.lane.b32.xlu0 %v1951_v8, %s1830_s29 }
  0x67   : > { %991 = vrot.lane.b32.xlu1 %v1935_v2, %s1830_s29 }
  0x69   : > { %997 = vrot.lane.b32.xlu0 %v1943_v5, %s1830_s29 }
  0x6b   : > { %995 = vrot.lane.b32.xlu1 %v1929_v0, %s1830_s29 }
  0x6d   : > { %1001 = vrot.lane.b32.xlu0 %v1954_v9, %s1830_s29 }
  0x6f   : > { %999 = vrot.lane.b32.xlu1 %v1940_v4, %s1830_s29 }
  0x71   : > { %1005 = vrot.lane.b32.xlu0 %v1946_v6, %s1830_s29 }
  0x73   : > { %1003 = vrot.lane.b32.xlu1 %v1932_v1, %s1830_s29 }
  0x75   : > { %1111 = vrot.lane.b32.xlu0 %v1951_v8, %s1831_s9 }
  0x77   : > { %1109 = vrot.lane.b32.xlu1 %v1935_v2, %s1831_s9 }
  0x79   : > { %1115 = vrot.lane.b32.xlu0 %v1943_v5, %s1831_s9 }
  0x7b   : > { %1113 = vrot.lane.b32.xlu1 %v1929_v0, %s1831_s9 }
  0x7d   : > { %1119 = vrot.lane.b32.xlu0 %v1954_v9, %s1831_s9 }
  0x7f   : > { %1117 = vrot.lane.b32.xlu1 %v1940_v4, %s1831_s9 }
  0x81   : > { %1123 = vrot.lane.b32.xlu0 %v1946_v6, %s1831_s9 }
  0x83   : > { %1121 = vrot.lane.b32.xlu1 %v1932_v1, %s1831_s9  ;;  %s1578_s9 = sshll.u32 %s1894_s25, 10 }
  0x85   : > { %1193 = vrot.lane.b32.xlu0 %v1951_v8, %s1832_s12 }
  0x87   : > { %1191 = vrot.lane.b32.xlu1 %v1935_v2, %s1832_s12 }
  0x89   : > { %1197 = vrot.lane.b32.xlu0 %v1943_v5, %s1832_s12 }
  0x8b   : > { %1195 = vrot.lane.b32.xlu1 %v1929_v0, %s1832_s12 }
  0x8d   : > { %1201 = vrot.lane.b32.xlu0 %v1954_v9, %s1832_s12 }
  0x8f   : > { %1199 = vrot.lane.b32.xlu1 %v1940_v4, %s1832_s12 }
  0x91   : > { %1205 = vrot.lane.b32.xlu0 %v1946_v6, %s1832_s12 }
  0x93   : > { %1203 = vrot.lane.b32.xlu1 %v1932_v1, %s1832_s12 }
  0x95   : > { %1275 = vrot.lane.b32.xlu0 %v1951_v8, %s1833_s14 }
  0x97   : > { %1273 = vrot.lane.b32.xlu1 %v1935_v2, %s1833_s14 }
  0x99   : > { %1279 = vrot.lane.b32.xlu0 %v1943_v5, %s1833_s14 }
  0x9b   : > { %1277 = vrot.lane.b32.xlu1 %v1929_v0, %s1833_s14 }
  0x9d   : > { %1283 = vrot.lane.b32.xlu0 %v1954_v9, %s1833_s14 }
  0x9f   : > { %1281 = vrot.lane.b32.xlu1 %v1940_v4, %s1833_s14 }
  0xa1   : > { %1287 = vrot.lane.b32.xlu0 %v1946_v6, %s1833_s14 }
  0xa3   : > { %1285 = vrot.lane.b32.xlu1 %v1932_v1, %s1833_s14  ;;  %s2680_s14 = scalar_lea.hbm %s2733_s6, %s1578_s9 }
  0xa5   : > { %1357 = vrot.lane.b32.xlu0 %v1951_v8, %s1834_s19 }
  0xa7   : > { %1355 = vrot.lane.b32.xlu1 %v1935_v2, %s1834_s19  ;;  %v387_v2 = vld [vmem:[%s2729_s2 + $0x108] sm:$0xff] }
  0xa9   : > { %1361 = vrot.lane.b32.xlu0 %v1943_v5, %s1834_s19 }
  0xab   : > { %v266_v14 = vpop.xlane.xlu1 %265  ;;  %1359 = vrot.lane.b32.xlu1 %v1929_v0, %s1834_s19 }
  0xac   : > { %v260_v15 = vpop.xlane.xlu0 %259  ;;  %v272_v20 = vmul.f32 0.0069444445, %v266_v14 }
  0xad   : > { %v270_v18 = vmul.f32 0.0069444445, %v260_v15  ;;  %1365 = vrot.lane.b32.xlu0 %v1954_v9, %s1834_s19  ;;  %v388_v9 = vld [vmem:[%s2729_s2 + $0x110] sm:$0xff] }
  0xaf   : > { %v269_v16 = vpop.xlane.xlu1 %268  ;;  %1363 = vrot.lane.b32.xlu1 %v1940_v4, %s1834_s19 }
  0xb0   : > { %v263_v17 = vpop.xlane.xlu0 %262  ;;  %v273_v21 = vmul.f32 0.0069444445, %v269_v16 }
  0xb1   : > { %v271_v19 = vmul.f32 0.0069444445, %v263_v17  ;;  %v389_v17 = vld [vmem:[%s2729_s2 + $0x118] sm:$0xff] }
  0xb2   : > { %v1692_v23 = vpack.c.bf16 %v273_v21, %v272_v20 }
  0xb3   : > { %v1689_v22 = vpack.c.bf16 %v271_v19, %v270_v18  ;;  %v2167_v7 = vpop.permute.xlu1 %746 }
  0xb4   : > { %v745_v8 = vpop.permute.xlu0 %744 }
  0xb5   : > { %1690 = vmatpush3.bf16.msra.mxu0 %v1689_v22 }
  0xb6   : > { %1691 = vmatprep.subr.bf16.mxu0 %v1823_v12  ;;  %v386_v12 = vld [vmem:[%s2729_s2 + $0x100] sm:$0xff] }
  0xb7   : > { %v2184_v5 = vpop.permute.xlu1 %748 }
  0xb8   : > { %v753_v13 = vpop.permute.xlu0 %752 }
  0xb9   : > { %1693 = vmatpush3.bf16.msra.mxu0 %v1692_v23  ;;  %v2190_v14 = vsel %vm762_vm3, %v745_v8, %v753_v13  ;;  %v2194_v15 = vsel %vm762_vm3, %v753_v13, %v745_v8 }
  0xbb   : > { %v751_v16 = vpop.permute.xlu1 %750 }
  0xbc   : > { %1630 = vmatmul.mubr.msk.f32.vlgmr.msra.gmra.mrb[0].mxu0 %vm275_vm1, %v274_v24  ;;  %v2223_v21 = vpop.permute.xlu0 %756 }
  0xbd   : > { %1634 = vmatprep.mubr.msk.f32.mxu0 %vm390_vm2, %v354_v25 }
  0xbf   : > { %v2212_v18 = vpop.permute.xlu1 %754 }
  0xc0   : > { %v830_v23 = vpop.permute.xlu0 %829 }
  0xc3   : > { %v759_v19 = vpop.permute.xlu1 %758 }
  0xc4   : > { %v2217_v0 = vsel %vm762_vm3, %v751_v16, %v759_v19  ;;  %v2221_v20 = vsel %vm762_vm3, %v759_v19, %v751_v16  ;;  %v834_v25 = vpop.permute.xlu0 %833 }
  0xc7   : > { %v828_v22 = vpop.permute.xlu1 %827 }
  0xc8   : > { %v838_v26 = vpop.permute.xlu0 %837 }
  0xcb   : > { %v832_v24 = vpop.permute.xlu1 %831 }
  0xcf   : > { %v836_v4 = vpop.permute.xlu1 %835 }
  0xd0   : > { %v2226_v27 = vsel %vm843_vm4, %v828_v22, %v836_v4 }
 0x18f   : > { %v345_v29 = vpop.f32.mrb[0].mxu0 }
 0x190   : > { %v350_v31 = vmul.f32 %v349_v28, %v345_v29  ;;  %v1631_v32 = vpop.f32.mrb[1].mxu0  ;;  %v2228_v28 = vsel %vm843_vm4, %v836_v4, %v828_v22  ;;  %v2230_v29 = vsel %vm843_vm4, %v830_v23, %v838_v26 }
 0x191   : > { %v842_v32 = vpop.permute.xlu0 %841 }
 0x192   : > { %v352_v33 = vadd.f32 %v351_v30, %v350_v31  ;;  %v2232_v30 = vsel %vm843_vm4, %v838_v26, %v830_v23  ;;  %v840_v31 = vpop.permute.xlu1 %839 }
 0x194   : > { %v353_v34 = vmax.f32 %v352_v33, 0.0  ;;  %v2234_v33 = vsel %vm843_vm4, %v832_v24, %v840_v31 }
 0x196   : > { %1632 = vmatprep.subr.mxu0 %v353_v34  ;;  %1694 = vmatprep.subr.mxu1 %v353_v34 }
 0x197   : > { %1633 = vmatpush3.msra.mxu0 %v353_v34  ;;  %1695 = vmatpush3.msra.mxu1 %v353_v34  ;;  %v2236_v34 = vsel %vm843_vm4, %v840_v31, %v832_v24 }
 0x198   : > { %1635 = vmatmul.mubr.msk.f32.vlgmr.msra.gmra.mrb[2].mxu0 %vm390_vm2, %v355_v35  ;;  %1656 = vmatmul.mubr.msk.f32.vlgmr.msra.gmra.mrb[0].mxu1 %vm390_vm2, %v369_v36  ;;  %v2238_v35 = vsel %vm843_vm4, %v834_v25, %v842_v32  ;;  %v2240_v36 = vsel %vm843_vm4, %v842_v32, %v834_v25 }
 0x199   : > { %1637 = vmatprep.mubr.msk.f32.mxu0 %vm390_vm2, %v356_v37  ;;  %1658 = vmatprep.mubr.msk.f32.mxu1 %vm390_vm2, %v370_v38  ;;  %v910_v37 = vpop.permute.xlu1 %909  ;;  %v912_v38 = vpop.permute.xlu0 %911 }
 0x19c   : > { %1638 = vmatmul.mubr.msk.f32.gmra.mrb[4].mxu0 %vm390_vm2, %v357_v39  ;;  %1659 = vmatmul.mubr.msk.f32.gmra.mrb[2].mxu1 %vm390_vm2, %v371_v40 }
 0x19d   : > { %1640 = vmatprep.mubr.msk.f32.mxu0 %vm390_vm2, %v358_v41  ;;  %1661 = vmatprep.mubr.msk.f32.mxu1 %vm390_vm2, %v372_v42  ;;  %v914_v39 = vpop.permute.xlu1 %913  ;;  %v916_v40 = vpop.permute.xlu0 %915 }
 0x1a0   : > { %1641 = vmatmul.mubr.msk.f32.gmra.mrb[6].mxu0 %vm390_vm2, %v359_v43  ;;  %1662 = vmatmul.mubr.msk.f32.gmra.mrb[4].mxu1 %vm390_vm2, %v373_v44 }
 0x1a1   : > { %1643 = vmatprep.mubr.msk.f32.mxu0 %vm390_vm2, %v360_v45  ;;  %1664 = vmatprep.mubr.msk.f32.mxu1 %vm390_vm2, %v374_v46  ;;  %v918_v41 = vpop.permute.xlu1 %917  ;;  %v920_v42 = vpop.permute.xlu0 %919 }
 0x1a2   : > { %v2243_v43 = vsel %vm925_vm5, %v910_v37, %v918_v41  ;;  %v2245_v44 = vsel %vm925_vm5, %v918_v41, %v910_v37  ;;  %v2247_v45 = vsel %vm925_vm5, %v912_v38, %v920_v42  ;;  %v2249_v46 = vsel %vm925_vm5, %v920_v42, %v912_v38 }
 0x1a4   : > { %1644 = vmatmul.mubr.msk.f32.gmra.mrb[8].mxu0 %vm390_vm2, %v361_v47  ;;  %1665 = vmatmul.mubr.msk.f32.gmra.mrb[6].mxu1 %vm390_vm2, %v375_v48 }
 0x1a5   : > { %1646 = vmatprep.mubr.msk.f32.mxu0 %vm390_vm2, %v362_v49  ;;  %1667 = vmatprep.mubr.msk.f32.mxu1 %vm390_vm2, %v376_v50  ;;  %v922_v47 = vpop.permute.xlu1 %921  ;;  %v924_v48 = vpop.permute.xlu0 %923 }
 0x1a6   : > { %v2251_v49 = vsel %vm925_vm5, %v914_v39, %v922_v47  ;;  %v2253_v50 = vsel %vm925_vm5, %v922_v47, %v914_v39 }
 0x1a8   : > { %1647 = vmatmul.mubr.msk.f32.gmra.mrb[10].mxu0 %vm390_vm2, %v363_v51  ;;  %1668 = vmatmul.mubr.msk.f32.gmra.mrb[8].mxu1 %vm390_vm2, %v377_v52  ;;  %v2255_v51 = vsel %vm925_vm5, %v916_v40, %v924_v48  ;;  %v2257_v52 = vsel %vm925_vm5, %v924_v48, %v916_v40 }
 0x1a9   : > { %1649 = vmatprep.mubr.msk.f32.mxu0 %vm390_vm2, %v364_v53  ;;  %1670 = vmatprep.mubr.msk.f32.mxu1 %vm390_vm2, %v378_v54  ;;  %v992_v53 = vpop.permute.xlu1 %991  ;;  %v994_v54 = vpop.permute.xlu0 %993 }
 0x1ac   : > { %1650 = vmatmul.mubr.msk.f32.gmra.mrb[12].mxu0 %vm390_vm2, %v365_v55  ;;  %1671 = vmatmul.mubr.msk.f32.gmra.mrb[10].mxu1 %vm390_vm2, %v379_v56 }
 0x1ad   : > { %1652 = vmatprep.mubr.msk.f32.mxu0 %vm390_vm2, %v366_v57  ;;  %1673 = vmatprep.mubr.msk.f32.mxu1 %vm390_vm2, %v380_v58  ;;  %v996_v55 = vpop.permute.xlu1 %995  ;;  %v998_v56 = vpop.permute.xlu0 %997 }
 0x1b0   : > { %1653 = vmatmul.mubr.msk.f32.gmra.mrb[14].mxu0 %vm390_vm2, %v367_v59  ;;  %1674 = vmatmul.mubr.msk.f32.gmra.mrb[12].mxu1 %vm390_vm2, %v381_v60 }
 0x1b1   : > { %1676 = vmatprep.mubr.msk.f32.mxu1 %vm390_vm2, %v382_v61  ;;  %v1000_v57 = vpop.permute.xlu1 %999  ;;  %v1002_v58 = vpop.permute.xlu0 %1001 }
 0x1b2   : > { %v2260_v59 = vsel %vm1007_vm6, %v992_v53, %v1000_v57  ;;  %v2262_v60 = vsel %vm1007_vm6, %v1000_v57, %v992_v53  ;;  %v2264_v61 = vsel %vm1007_vm6, %v994_v54, %v1002_v58 }
 0x1b4   : > { %1677 = vmatmul.mubr.msk.f32.gmra.mrb[14].mxu1 %vm390_vm2, %v383_v62  ;;  %v2266_v62 = vsel %vm1007_vm6, %v1002_v58, %v994_v54 }
 0x1b5   : > { %1679 = vmatprep.mubr.msk.f32.mxu1 %vm390_vm2, %v384_v3  ;;  %v1004_v3 = vpop.permute.xlu1 %1003  ;;  %v1006_v8 = vpop.permute.xlu0 %1005 }
 0x1b6   : > { %v2272_v13 = vsel %vm1007_vm6, %v998_v56, %v1006_v8 }
 0x1b8   : > { %1680 = vmatmul.mubr.msk.f32.gmra.mrb[16].mxu1 %vm390_vm2, %v385_v11  ;;  %v2268_v11 = vsel %vm1007_vm6, %v996_v55, %v1004_v3 }
 0x1b9   : > { %1682 = vmatprep.mubr.msk.f32.mxu1 %vm390_vm2, %v386_v12  ;;  %v2270_v12 = vsel %vm1007_vm6, %v1004_v3, %v996_v55  ;;  %v1112_v16 = vpop.permute.xlu0 %1111 }
 0x1bc   : > { %1683 = vmatmul.mubr.msk.f32.gmra.mrb[18].mxu1 %vm390_vm2, %v387_v2  ;;  %v2274_v2 = vsel %vm1007_vm6, %v1006_v8, %v998_v56 }
 0x1bd   : > { %1685 = vmatprep.mubr.msk.f32.mxu1 %vm390_vm2, %v388_v9  ;;  %v1110_v9 = vpop.permute.xlu1 %1109  ;;  %v1116_v19 = vpop.permute.xlu0 %1115 }
 0x1c0   : > { %1686 = vmatmul.mubr.msk.f32.gmra.mrb[20].mxu1 %vm390_vm2, %v389_v17 }
 0x1c1   : > { %v1114_v17 = vpop.permute.xlu1 %1113  ;;  %v1120_v23 = vpop.permute.xlu0 %1119 }
 0x1c2   : > { %v2281_v4 = vsel %vm1125_vm7, %v1112_v16, %v1120_v23  ;;  %v2283_v26 = vsel %vm1125_vm7, %v1120_v23, %v1112_v16 }
 0x1c5   : > { %v1118_v22 = vpop.permute.xlu1 %1117  ;;  %v1124_v32 = vpop.permute.xlu0 %1123 }
 0x1c6   : > { %v2277_v24 = vsel %vm1125_vm7, %v1110_v9, %v1118_v22  ;;  %v2279_v25 = vsel %vm1125_vm7, %v1118_v22, %v1110_v9  ;;  %v2289_v39 = vsel %vm1125_vm7, %v1116_v19, %v1124_v32  ;;  %v2291_v40 = vsel %vm1125_vm7, %v1124_v32, %v1116_v19 }
 0x1c7   : > { %2747 = vst [vmem:[#allocation7_spill] sm:$0xff] %v2289_v39  ;;  %2748 = vst [vmem:[#allocation8_spill] sm:$0xff] %v2291_v40 }
 0x1c9   : > { %v1122_v31 = vpop.permute.xlu1 %1121  ;;  %v1194_v42 = vpop.permute.xlu0 %1193 }
 0x1ca   : > { %v2285_v37 = vsel %vm1125_vm7, %v1114_v17, %v1122_v31  ;;  %v2287_v38 = vsel %vm1125_vm7, %v1122_v31, %v1114_v17 }
 0x1cb   : > { %2746 = vst [vmem:[#allocation6_spill] sm:$0xff] %v2287_v38 }
 0x1cd   : > { %v1192_v41 = vpop.permute.xlu1 %1191  ;;  %v1198_v48 = vpop.permute.xlu0 %1197 }
 0x1d1   : > { %v1196_v47 = vpop.permute.xlu1 %1195  ;;  %v1202_v54 = vpop.permute.xlu0 %1201 }
 0x1d2   : > { %v2298_v57 = vsel %vm1207_vm8, %v1194_v42, %v1202_v54  ;;  %v2300_v58 = vsel %vm1207_vm8, %v1202_v54, %v1194_v42 }
 0x1d3   : > { %2751 = vst [vmem:[#allocation11_spill] sm:$0xff] %v2298_v57  ;;  %2752 = vst [vmem:[#allocation12_spill] sm:$0xff] %v2300_v58 }
 0x1d5   : > { %v1200_v53 = vpop.permute.xlu1 %1199  ;;  %v1206_v8 = vpop.permute.xlu0 %1205 }
 0x1d6   : > { %v2294_v55 = vsel %vm1207_vm8, %v1192_v41, %v1200_v53  ;;  %v2296_v56 = vsel %vm1207_vm8, %v1200_v53, %v1192_v41  ;;  %v2306_v17 = vsel %vm1207_vm8, %v1198_v48, %v1206_v8  ;;  %v2308_v19 = vsel %vm1207_vm8, %v1206_v8, %v1198_v48 }
 0x1d7   : > { %2749 = vst [vmem:[#allocation9_spill] sm:$0xff] %v2294_v55  ;;  %2750 = vst [vmem:[#allocation10_spill] sm:$0xff] %v2296_v56 }
 0x1d8   : > { %2755 = vst [vmem:[#allocation15_spill] sm:$0xff] %v2306_v17  ;;  %2756 = vst [vmem:[#allocation16_spill] sm:$0xff] %v2308_v19 }
 0x1d9   : > { %v1204_v3 = vpop.permute.xlu1 %1203  ;;  %v1276_v23 = vpop.permute.xlu0 %1275 }
 0x1da   : > { %v2302_v9 = vsel %vm1207_vm8, %v1196_v47, %v1204_v3  ;;  %v2304_v16 = vsel %vm1207_vm8, %v1204_v3, %v1196_v47 }
 0x1db   : > { %2753 = vst [vmem:[#allocation13_spill] sm:$0xff] %v2302_v9  ;;  %2754 = vst [vmem:[#allocation14_spill] sm:$0xff] %v2304_v16 }
 0x1dd   : > { %v1274_v22 = vpop.permute.xlu1 %1273  ;;  %v1280_v32 = vpop.permute.xlu0 %1279 }
 0x1e1   : > { %v1278_v31 = vpop.permute.xlu1 %1277  ;;  %v1284_v53 = vpop.permute.xlu0 %1283 }
 0x1e2   : > { %v2315_v63 = vsel %vm1289_vm9, %v1276_v23, %v1284_v53  ;;  %v2317_v47 = vsel %vm1289_vm9, %v1284_v53, %v1276_v23 }
 0x1e3   : > { %2759 = vst [vmem:[#allocation19_spill] sm:$0xff] %v2315_v63  ;;  %2760 = vst [vmem:[#allocation20_spill] sm:$0xff] %v2317_v47 }
 0x1e5   : > { %v1282_v41 = vpop.permute.xlu1 %1281  ;;  %v1288_v17 = vpop.permute.xlu0 %1287 }
 0x1e6   : > { %v2311_v42 = vsel %vm1289_vm9, %v1274_v22, %v1282_v41  ;;  %v2313_v54 = vsel %vm1289_vm9, %v1282_v41, %v1274_v22  ;;  %v2323_v19 = vsel %vm1289_vm9, %v1280_v32, %v1288_v17  ;;  %v2325_v16 = vsel %vm1289_vm9, %v1288_v17, %v1280_v32 }
 0x1e7   : > { %2757 = vst [vmem:[#allocation17_spill] sm:$0xff] %v2311_v42  ;;  %2758 = vst [vmem:[#allocation18_spill] sm:$0xff] %v2313_v54 }
 0x1e8   : > { %2763 = vst [vmem:[#allocation23_spill] sm:$0xff] %v2323_v19  ;;  %2764 = vst [vmem:[#allocation24_spill] sm:$0xff] %v2325_v16 }
 0x1e9   : > { %v1286_v3 = vpop.permute.xlu1 %1285  ;;  %v1358_v58 = vpop.permute.xlu0 %1357 }
 0x1ea   : > { %v2319_v48 = vsel %vm1289_vm9, %v1278_v31, %v1286_v3  ;;  %v2321_v8 = vsel %vm1289_vm9, %v1286_v3, %v1278_v31 }
 0x1eb   : > { %2761 = vst [vmem:[#allocation21_spill] sm:$0xff] %v2319_v48  ;;  %2762 = vst [vmem:[#allocation22_spill] sm:$0xff] %v2321_v8 }
 0x1ed   : > { %v1356_v9 = vpop.permute.xlu1 %1355  ;;  %v2329_v22 = vpop.permute.xlu0 %1361 }
 0x1ee   : > { %2766 = vst [vmem:[#allocation26_spill] sm:$0xff] %v2329_v22 }
 0x1f1   : > { %v2327_v57 = vpop.permute.xlu1 %1359  ;;  %v1366_v41 = vpop.permute.xlu0 %1365 }
 0x1f2   : > { %2765 = vst [vmem:[#allocation25_spill] sm:$0xff] %v2327_v57  ;;  %v2342_v17 = vsel %vm1371_vm10, %v1358_v58, %v1366_v41  ;;  %v2346_v32 = vsel %vm1371_vm10, %v1366_v41, %v1358_v58 }
 0x1f3   : > { %2769 = vst [vmem:[#allocation29_spill] sm:$0xff] %v2342_v17  ;;  %2770 = vst [vmem:[#allocation30_spill] sm:$0xff] %v2346_v32 }
 0x1f5   : > { %v1364_v23 = vpop.permute.xlu1 %1363 }
 0x1f6   : > { %v2334_v53 = vsel %vm1371_vm10, %v1356_v9, %v1364_v23  ;;  %v2338_v31 = vsel %vm1371_vm10, %v1364_v23, %v1356_v9 }
 0x1f7   : > { %2767 = vst [vmem:[#allocation27_spill] sm:$0xff] %v2334_v53  ;;  %2768 = vst [vmem:[#allocation28_spill] sm:$0xff] %v2338_v31 }
 0x26b   : > { %v1636_v3 = vpop.f32.mrb[2].mxu0  ;;  %v1657_v22 = vpop.f32.mrb[0].mxu1 }
 0x26c   : > { %1054 = vperm.xlu0 %1750, %v1657_v22   ;;  %798 = vperm.xlu1 %1749, %v1636_v3   ;;  %v565_v57 = vpop.f32.mrb[3].mxu0  ;;  %v635_v16 = vpop.f32.mrb[1].mxu1 }
 0x26f   : > { %v1639_v19 = vpop.f32.mrb[4].mxu0  ;;  %v1660_v53 = vpop.f32.mrb[2].mxu1 }
 0x270   : > { %1049 = vperm.xlu1 %1749, %v635_v16   ;;  %793 = vperm.xlu0 %1750, %v565_v57   ;;  %v575_v9 = vpop.f32.mrb[5].mxu0  ;;  %v645_v23 = vpop.f32.mrb[3].mxu1 }
 0x273   : > { %v1642_v31 = vpop.f32.mrb[6].mxu0  ;;  %v1663_v8 = vpop.f32.mrb[4].mxu1 }
 0x274   : > { %808 = vperm.xlu0 %1750, %v1639_v19   ;;  %803 = vperm.xlu1 %1749, %v575_v9   ;;  %v585_v17 = vpop.f32.mrb[7].mxu0  ;;  %v655_v48 = vpop.f32.mrb[5].mxu1 }
 0x277   : > { %v1645_v58 = vpop.f32.mrb[8].mxu0  ;;  %v1666_v41 = vpop.f32.mrb[6].mxu1 }
 0x278   : > { %1080 = vperm.xlu0 %1750, %v1660_v53   ;;  %1075 = vperm.xlu1 %1749, %v645_v23   ;;  %v595_v22 = vpop.f32.mrb[9].mxu0  ;;  %v665_v3 = vpop.f32.mrb[7].mxu1 }
 0x27b   : > { %v1648_v32 = vpop.f32.mrb[10].mxu0  ;;  %v1669_v47 = vpop.f32.mrb[8].mxu1 }
 0x27c   : > { %880 = vperm.xlu0 %1750, %v1642_v31   ;;  %875 = vperm.xlu1 %1749, %v585_v17   ;;  %v605_v16 = vpop.f32.mrb[11].mxu0  ;;  %v675_v57 = vpop.f32.mrb[9].mxu1 }
 0x27f   : > { %v1651_v63 = vpop.f32.mrb[12].mxu0  ;;  %v1672_v54 = vpop.f32.mrb[10].mxu1 }
 0x280   : > { %1090 = vperm.xlu0 %1750, %v1663_v8   ;;  %1085 = vperm.xlu1 %1749, %v655_v48   ;;  %v615_v19 = vpop.f32.mrb[13].mxu0  ;;  %v685_v9 = vpop.f32.mrb[11].mxu1 }
 0x283   : > { %v1654_v42 = vpop.f32.mrb[14].mxu0  ;;  %v1675_v56 = vpop.f32.mrb[12].mxu1 }
 0x284   : > { %890 = vperm.xlu0 %1750, %v1645_v58   ;;  %885 = vperm.xlu1 %1749, %v595_v22   ;;  %v625_v53 = vpop.f32.mrb[15].mxu0  ;;  %v695_v23 = vpop.f32.mrb[13].mxu1 }
 0x287   : > { %v1678_v55 = vpop.f32.mrb[14].mxu1 }
 0x288   : > { %1162 = vperm.xlu0 %1750, %v1666_v41   ;;  %1157 = vperm.xlu1 %1749, %v665_v3   ;;  %v705_v40 = vpop.f32.mrb[15].mxu1  ;;  %v771_v3 = vld [vmem:[%s2732_s5] sm:$0x3] }
 0x28b   : > { %v1681_v31 = vpop.f32.mrb[16].mxu1 }
 0x28c   : > { %962 = vperm.xlu0 %1750, %v1648_v32   ;;  %957 = vperm.xlu1 %1749, %v605_v16   ;;  %v715_v17 = vpop.f32.mrb[17].mxu1 }
 0x28f   : > { %v1684_v39 = vpop.f32.mrb[18].mxu1 }
 0x290   : > { %1172 = vperm.xlu0 %1750, %v1669_v47   ;;  %1167 = vperm.xlu1 %1749, %v675_v57   ;;  %v725_v48 = vpop.f32.mrb[19].mxu1 }
 0x293   : > { %v1687_v8 = vpop.f32.mrb[20].mxu1 }
 0x294   : > { %972 = vperm.xlu0 %1750, %v1651_v63   ;;  %967 = vperm.xlu1 %1749, %v615_v19   ;;  %v735_v38 = vpop.f32.mrb[21].mxu1  ;;  %v2771_v63 = vlaneseq }
 0x298   : > { %1244 = vperm.xlu0 %1750, %v1672_v54   ;;  %1239 = vperm.xlu1 %1749, %v685_v9   ;;  %v774_v54 = vshrl.u32 %v2771_v63, 7  ;;  %v764_v9 = vsel %vm762_vm3, %v2167_v7, %v2212_v18 }
 0x29c   : > { %1044 = vperm.xlu0 %1750, %v1654_v42   ;;  %1039 = vperm.xlu1 %1749, %v625_v53   ;;  %v768_v53 = vsel %vm762_vm3, %v2212_v18, %v2167_v7 }
 0x2a0   : > { %1254 = vperm.xlu0 %1750, %v1675_v56   ;;  %1249 = vperm.xlu1 %1749, %v695_v23   ;;  %v1567_v56 = vld [vmem:[%s2732_s5 + $0x6] sm:$0x3] }
 0x2a4   : > { %1326 = vperm.xlu0 %1750, %v1678_v55   ;;  %1321 = vperm.xlu1 %1749, %v705_v40   ;;  %v2356_v55 = vsub.s32 0, %v774_v54  ;;  %v2358_v40 = vsub.s32 1, %v774_v54 }
 0x2a6   : > { %v780_v19 = vrot.slane %v771_v3, %v2358_v40 }
 0x2a8   : > { %1336 = vperm.xlu0 %1750, %v1681_v31   ;;  %1331 = vperm.xlu1 %1749, %v715_v17   ;;  %v786_v63 = vmul.f32 %v780_v19, %v764_v9 }
 0x2ac   : > { %1408 = vperm.xlu0 %1750, %v1684_v39   ;;  %1403 = vperm.xlu1 %1749, %v725_v48   ;;  %v2361_v39 = vrot.slane %v1567_v56, %v2356_v55 }
 0x2b0   : > { %1418 = vperm.xlu0 %1750, %v1687_v8   ;;  %1413 = vperm.xlu1 %1749, %v735_v38   ;;  %v2364_v38 = vrot.slane %v1567_v56, %v2358_v40  ;;  %v784_v56 = vmul.f32 %v780_v19, %v2190_v14  ;;  %v765_v14 = vsel %vm762_vm3, %v2184_v5, %v2223_v21 }
 0x2b4   : > { %1369 = vrot.lane.b32.xlu0 %v1946_v6, %s1834_s19  ;;  %1367 = vrot.lane.b32.xlu1 %v1932_v1, %s1834_s19  ;;  %v1035_v6 = vmul.f32 %v2361_v39, %v2274_v2  ;;  %v1036_v1 = vmul.f32 %v2364_v38, %v2272_v13  ;;  %v1565_v2 = vld [vmem:[%s2732_s5 + $0x2] sm:$0x3]  ;;  %v776_v13 = vrot.slane %v771_v3, %v2356_v55 }
 0x2b5   : > { %v858_v23 = vrot.slane %v1565_v2, %v2356_v55  ;;  %v862_v31 = vrot.slane %v1565_v2, %v2358_v40 }
 0x2b6   : > { %v785_v8 = vmul.f32 %v776_v13, %v768_v53  ;;  %v783_v54 = vmul.f32 %v776_v13, %v2194_v15 }
 0x2b7   : > { %v867_v7 = vmul.f32 %v858_v23, %v2232_v30  ;;  %v868_v18 = vmul.f32 %v862_v31, %v2230_v29 }
 0x2eb   : > { %v799_v42 = vpop.permute.xlu1 %798  ;;  %v1055_v47 = vpop.permute.xlu0 %1054 }
 0x2ec   : > { %v2370_v32 = vmul.f32 %v1055_v47, %v1035_v6  ;;  %v2372_v58 = vmul.f32 %v1055_v47, %v1036_v1  ;;  %v865_v6 = vmul.f32 %v858_v23, %v2228_v28  ;;  %v866_v1 = vmul.f32 %v862_v31, %v2226_v27 }
 0x2ed   : > { %v813_v47 = vmul.f32 %v799_v42, %v785_v8  ;;  %v814_v3 = vmul.f32 %v799_v42, %v786_v63  ;;  %v769_v27 = vsel %vm762_vm3, %v2223_v21, %v2184_v5  ;;  %v788_v63 = vmul.f32 %v780_v19, %v765_v14 }
 0x2ee   : > { %2772 = vst [vmem:[#allocation31_spill] sm:$0xff] %v2370_v32  ;;  %2773 = vst [vmem:[#allocation32_spill] sm:$0xff] %v2372_v58  ;;  %v787_v8 = vmul.f32 %v776_v13, %v769_v27  ;;  %v789_v5 = vmul.f32 %v776_v13, %v2221_v20  ;;  %v790_v21 = vmul.f32 %v780_v19, %v2217_v0 }
 0x2ef   : > { %v2374_v41 = vpop.permute.xlu1 %1049  ;;  %v794_v22 = vpop.permute.xlu0 %793 }
 0x2f0   : > { %v811_v2 = vmul.f32 %v794_v22, %v783_v54  ;;  %v812_v58 = vmul.f32 %v794_v22, %v784_v56  ;;  %v871_v54 = vmul.f32 %v858_v23, %v2240_v36  ;;  %v872_v56 = vmul.f32 %v862_v31, %v2238_v35 }
 0x2f3   : > { %v804_v16 = vpop.permute.xlu1 %803  ;;  %v809_v57 = vpop.permute.xlu0 %808 }
 0x2f4   : > { %v816_v20 = vmul.f32 %v804_v16, %v788_v63  ;;  %v817_v13 = vmul.f32 %v809_v57, %v789_v5  ;;  %v818_v0 = vmul.f32 %v809_v57, %v790_v21 }
 0x2f7   : > { %v2394_v17 = vpop.permute.xlu1 %1075  ;;  %v2396_v48 = vpop.permute.xlu0 %1080 }
 0x2f8   : > { %2774 = vst [vmem:[#allocation33_spill] sm:$0xff] %v2394_v17  ;;  %2775 = vst [vmem:[#allocation34_spill] sm:$0xff] %v2396_v48 }
 0x2fb   : > { %v876_v32 = vpop.permute.xlu1 %875  ;;  %v881_v48 = vpop.permute.xlu0 %880 }
 0x2fc   : > { %v893_v53 = vmul.f32 %v876_v32, %v865_v6  ;;  %v894_v9 = vmul.f32 %v876_v32, %v866_v1  ;;  %v895_v17 = vmul.f32 %v881_v48, %v867_v7  ;;  %v896_v15 = vmul.f32 %v881_v48, %v868_v18  ;;  %v1566_v32 = vld [vmem:[%s2732_s5 + $0x4] sm:$0x3]  ;;  %v1568_v7 = vld [vmem:[%s2732_s5 + $0xa] sm:$0x3] }
 0x2fd   : > { %v940_v6 = vrot.slane %v1566_v32, %v2356_v55  ;;  %v944_v1 = vrot.slane %v1566_v32, %v2358_v40  ;;  %v815_v18 = vmul.f32 %v804_v16, %v787_v8  ;;  %v1140_v35 = vrot.slane %v1568_v7, %v2356_v55 }
 0x2fe   : > { %v2412_v28 = vadd.f32 %v893_v53, %v811_v2  ;;  %v2414_v29 = vadd.f32 %v894_v9, %v812_v58  ;;  %v2416_v30 = vadd.f32 %v895_v17, %v813_v47  ;;  %v2418_v42 = vadd.f32 %v896_v15, %v814_v3 }
 0x2ff   : > { %v2423_v22 = vpop.permute.xlu1 %1085  ;;  %v2425_v48 = vpop.permute.xlu0 %1090  ;;  %v869_v58 = vmul.f32 %v858_v23, %v2236_v34  ;;  %v870_v17 = vmul.f32 %v862_v31, %v2234_v33  ;;  %v1144_v23 = vrot.slane %v1568_v7, %v2358_v40  ;;  %v947_v16 = vmul.f32 %v940_v6, %v2245_v44 }
 0x300   : > { %v948_v57 = vmul.f32 %v944_v1, %v2243_v43  ;;  %v949_v15 = vmul.f32 %v940_v6, %v2249_v46  ;;  %v950_v14 = vmul.f32 %v944_v1, %v2247_v45  ;;  %v951_v8 = vmul.f32 %v940_v6, %v2253_v50  ;;  %v1569_v43 = vld [vmem:[%s2732_s5 + $0xc] sm:$0x3] }
 0x301   : > { %v952_v63 = vmul.f32 %v944_v1, %v2251_v49  ;;  %v953_v5 = vmul.f32 %v940_v6, %v2257_v52  ;;  %v954_v21 = vmul.f32 %v944_v1, %v2255_v51  ;;  %v2465_v44 = vmul.f32 %v2361_v39, %v2262_v60  ;;  %v1570_v60 = vld [vmem:[%s2732_s5 + $0xe] sm:$0x3]  ;;  %v1571_v1 = vld [vmem:[%s2732_s5 + $0x10] sm:$0x3] }
 0x302   : > { %v2469_v45 = vmul.f32 %v2364_v38, %v2260_v59  ;;  %v2473_v46 = vmul.f32 %v2361_v39, %v2266_v62  ;;  %v2477_v49 = vmul.f32 %v2364_v38, %v2264_v61  ;;  %v1033_v50 = vmul.f32 %v2361_v39, %v2270_v12 }
 0x303   : > { %v886_v19 = vpop.permute.xlu1 %885  ;;  %v891_v34 = vpop.permute.xlu0 %890  ;;  %v1034_v51 = vmul.f32 %v2364_v38, %v2268_v11  ;;  %v2484_v52 = vmul.f32 %v1140_v35, %v2277_v24  ;;  %v2487_v59 = vmul.f32 %v1144_v23, %v2279_v25  ;;  %v2493_v62 = vmul.f32 %v1140_v35, %v2281_v4 }
 0x304   : > { %v897_v47 = vmul.f32 %v886_v19, %v869_v58  ;;  %v898_v33 = vmul.f32 %v886_v19, %v870_v17  ;;  %v899_v3 = vmul.f32 %v891_v34, %v871_v54  ;;  %v900_v36 = vmul.f32 %v891_v34, %v872_v56  ;;  %v2776_v56 = vld [vmem:[#allocation6_spill] sm:$0xff]  ;;  %v2778_v19 = vld [vmem:[#allocation8_spill] sm:$0xff] }
 0x305   : > { %v2496_v61 = vmul.f32 %v1144_v23, %v2283_v26  ;;  %v1222_v12 = vrot.slane %v1569_v43, %v2356_v55  ;;  %v1226_v11 = vrot.slane %v1569_v43, %v2358_v40  ;;  %v2501_v54 = vmul.f32 %v1140_v35, %v2285_v37  ;;  %v2786_v43 = vld [vmem:[#allocation14_spill] sm:$0xff] }
 0x306   : > { %v2440_v31 = vadd.f32 %v897_v47, %v815_v18  ;;  %v2442_v2 = vadd.f32 %v898_v33, %v816_v20  ;;  %v2444_v53 = vadd.f32 %v899_v3, %v817_v13  ;;  %v2446_v9 = vadd.f32 %v900_v36, %v818_v0  ;;  %v2777_v13 = vld [vmem:[#allocation7_spill] sm:$0xff]  ;;  %v2779_v47 = vld [vmem:[#allocation9_spill] sm:$0xff] }
 0x307   : > { %v2452_v27 = vpop.permute.xlu1 %1157  ;;  %v2454_v32 = vpop.permute.xlu0 %1162  ;;  %v2504_v6 = vmul.f32 %v1144_v23, %v2776_v56  ;;  %v2507_v4 = vrot.slane %v1570_v60, %v2356_v55  ;;  %v2510_v26 = vrot.slane %v1570_v60, %v2358_v40  ;;  %v2528_v0 = vmul.f32 %v1140_v35, %v2777_v13  ;;  %v2791_v56 = vld [vmem:[#allocation19_spill] sm:$0xff]  ;;  %v2792_v13 = vld [vmem:[#allocation20_spill] sm:$0xff] }
 0x308   : > { %v2531_v34 = vmul.f32 %v1144_v23, %v2778_v19  ;;  %v2534_v33 = vmul.f32 %v1222_v12, %v2779_v47  ;;  %v2546_v35 = vrot.slane %v1571_v1, %v2356_v55  ;;  %v2549_v23 = vrot.slane %v1571_v1, %v2358_v40  ;;  %v2794_v47 = vld [vmem:[#allocation22_spill] sm:$0xff] }
 0x309   : > { %v2555_v60 = vmul.f32 %v1226_v11, %v2786_v43  ;;  %v2573_v1 = vmul.f32 %v2507_v4, %v2791_v56  ;;  %v1751_v56 = vld [vmem:[%s1926_s13] sm:$0xff] }
 0x30a   : > { %2783 = vst [vmem:[#allocation6_spill] sm:$0xff] %v2546_v35  ;;  %2784 = vst [vmem:[#allocation7_spill] sm:$0xff] %v2549_v23  ;;  %v1753_v23 = vld [vmem:[%s1926_s13 + $0x10] sm:$0xff] }
 0x30b   : > { %v958_v39 = vpop.permute.xlu1 %957  ;;  %v963_v24 = vpop.permute.xlu0 %962 }
 0x30c   : > { %v975_v38 = vmul.f32 %v958_v39, %v947_v16  ;;  %v976_v58 = vmul.f32 %v958_v39, %v948_v57  ;;  %v977_v25 = vmul.f32 %v963_v24, %v949_v15  ;;  %v978_v17 = vmul.f32 %v963_v24, %v950_v14  ;;  %v2781_v16 = vld [vmem:[#allocation11_spill] sm:$0xff]  ;;  %v2782_v57 = vld [vmem:[#allocation12_spill] sm:$0xff]  ;;  %v2785_v15 = vld [vmem:[#allocation13_spill] sm:$0xff] }
 0x30d   : > { %v2552_v14 = vmul.f32 %v1222_v12, %v2785_v15  ;;  %v2787_v39 = vld [vmem:[#allocation15_spill] sm:$0xff] }
 0x30e   : > { %v2516_v7 = vadd.f32 %v975_v38, %v2412_v28  ;;  %v2519_v18 = vadd.f32 %v976_v58, %v2414_v29  ;;  %v2522_v37 = vadd.f32 %v977_v25, %v2416_v30  ;;  %v2525_v20 = vadd.f32 %v978_v17, %v2418_v42  ;;  %v2780_v28 = vld [vmem:[#allocation10_spill] sm:$0xff]  ;;  %v2788_v38 = vld [vmem:[#allocation16_spill] sm:$0xff]  ;;  %v2789_v25 = vld [vmem:[#allocation17_spill] sm:$0xff] }
 0x30f   : > { %v2537_v3 = vmul.f32 %v1226_v11, %v2780_v28  ;;  %v1168_v29 = vpop.permute.xlu1 %1167  ;;  %v1173_v36 = vpop.permute.xlu0 %1172  ;;  %v2540_v30 = vmul.f32 %v1222_v12, %v2781_v16  ;;  %v2543_v42 = vmul.f32 %v1226_v11, %v2782_v57  ;;  %v2558_v24 = vmul.f32 %v1222_v12, %v2787_v39  ;;  %v2790_v17 = vld [vmem:[#allocation18_spill] sm:$0xff] }
 0x310   : > { %v2561_v58 = vmul.f32 %v1226_v11, %v2788_v38  ;;  %v2565_v55 = vmul.f32 %v2507_v4, %v2789_v25  ;;  %v2569_v40 = vmul.f32 %v2510_v26, %v2790_v17  ;;  %v2577_v12 = vmul.f32 %v2510_v26, %v2792_v13  ;;  %v2793_v11 = vld [vmem:[#allocation21_spill] sm:$0xff] }
 0x311   : > { %v2581_v19 = vmul.f32 %v2507_v4, %v2793_v11  ;;  %v2585_v28 = vmul.f32 %v2510_v26, %v2794_v47  ;;  %v1061_v16 = vmul.f32 %v2374_v41, %v1033_v50  ;;  %v1062_v57 = vmul.f32 %v2374_v41, %v1034_v51  ;;  %v2796_v13 = vld [vmem:[#allocation33_spill] sm:$0xff]  ;;  %v2797_v50 = vld [vmem:[#allocation34_spill] sm:$0xff]  ;;  %v1754_v41 = vld [vmem:[%s1926_s13 + $0x18] sm:$0xff] }
 0x312   : > { %v1093_v11 = vmul.f32 %v1751_v56, %v2796_v13  ;;  %v1094_v47 = vmul.f32 %v1752_v10, %v2796_v13  ;;  %v1095_v35 = vmul.f32 %v1753_v23, %v2797_v50  ;;  %v1096_v51 = vmul.f32 %v1754_v41, %v2797_v50  ;;  %v1756_v56 = vld [vmem:[%s1926_s13 + $0x28] sm:$0xff]  ;;  %v1757_v13 = vld [vmem:[%s1926_s13 + $0x30] sm:$0xff] }
 0x313   : > { %2795 = vst [vmem:[#allocation8_spill] sm:$0xff] %v2585_v28  ;;  %v968_v15 = vpop.permute.xlu1 %967  ;;  %v973_v43 = vpop.permute.xlu0 %972  ;;  %v1098_v10 = vmul.f32 %v1756_v56, %v2423_v22  ;;  %v1099_v23 = vmul.f32 %v1757_v13, %v2425_v48  ;;  %v1758_v28 = vld [vmem:[%s1926_s13 + $0x38] sm:$0xff] }
 0x314   : > { %v979_v39 = vmul.f32 %v968_v15, %v951_v8  ;;  %v980_v38 = vmul.f32 %v968_v15, %v952_v63  ;;  %v981_v25 = vmul.f32 %v973_v43, %v953_v5  ;;  %v982_v17 = vmul.f32 %v973_v43, %v954_v21  ;;  %v1755_v15 = vld [vmem:[%s1926_s13 + $0x20] sm:$0xff]  ;;  %s242_s13 = sand.u32 1, %s1813_s22  }
 0x315   : > { %v1097_v43 = vmul.f32 %v1755_v15, %v2423_v22  ;;  %v1100_v50 = vmul.f32 %v1758_v28, %v2425_v48  ;;  %v1176_v22 = vmul.f32 %v2452_v27, %v2487_v59  ;;  %v1177_v15 = vmul.f32 %v2454_v32, %v2493_v62  ;;  %s1525_s19 = sshll.u32 %s242_s13, 6  ;;  %s2686_s25 = scalar_lea.sflag [#allocation3], %s242_s13 }
 0x316   : > { %v987_v8 = vadd.f32 %v979_v39, %v2440_v31  ;;  %v988_v63 = vadd.f32 %v980_v38, %v2442_v2  ;;  %v989_v5 = vadd.f32 %v981_v25, %v2444_v53  ;;  %v990_v21 = vadd.f32 %v982_v17, %v2446_v9  ;;  %v2798_v38 = vld [vmem:[#allocation31_spill] sm:$0xff]  ;;  %v2799_v25 = vld [vmem:[#allocation32_spill] sm:$0xff]  ;;  %s244_s29 = scalar_lea.vmem [#allocation2], %s1525_s19 }
 0x317   : > { %v1240_v41 = vpop.permute.xlu1 %1239  ;;  %v1245_v31 = vpop.permute.xlu0 %1244  ;;  %v1175_v17 = vmul.f32 %v2452_v27, %v2484_v52  ;;  %v1178_v48 = vmul.f32 %v2454_v32, %v2496_v61  ;;  %v1182_v52 = vmul.f32 %v1173_v36, %v2531_v34  ;;  %s1459_s10 = sshll.u32 %s244_s29, 4  ;;  %s2682_s10 = int_to_ptr.vmem [resolvable:$true] %s1459_s10 }
 0x318   : > { %v1069_v39 = vadd.f32 %v1061_v16, %v987_v8  ;;  %v1070_v2 = vadd.f32 %v1062_v57, %v988_v63  ;;  %v1071_v53 = vadd.f32 %v2798_v38, %v989_v5  ;;  %v1072_v9 = vadd.f32 %v2799_v25, %v990_v21  ;;  %s1759_s15 = scalar_lea.vmem %s2682_s10, 1024  ;;  %p1766_p0 = scmp.lt.s32.totalorder %s2682_s10, %s1764_s17 }
 0x319   : > { %v1179_v8 = vmul.f32 %v1168_v29, %v2501_v54  ;;  %v1180_v63 = vmul.f32 %v1168_v29, %v2504_v6  ;;  %v1181_v5 = vmul.f32 %v1173_v36, %v2528_v0  ;;  %p1760_p11 = scmp.ne.s32.totalorder %s2682_s10, %s1759_s15  ;;  %p1767_p1 = scmp.lt.s32.totalorder %s1765_s18, %s1759_s15 }
 0x31a   : > { %v1105_v28 = vadd.f32 %v1097_v43, %v1069_v39  ;;  %v1106_v56 = vadd.f32 %v1098_v10, %v1070_v2  ;;  %v1107_v16 = vadd.f32 %v1099_v23, %v1071_v53  ;;  %v1108_v57 = vadd.f32 %v1100_v50, %v1072_v9 }
 0x31b   : > { %v1040_v21 = vpop.permute.xlu1 %1039  ;;  %v1045_v27 = vpop.permute.xlu0 %1044  ;;  %p1761_p12 = pnand %p1760_p11, %p1911_p5  ;;  %p1768_p2 = por %p1767_p1, %p1766_p0 }
 0x31c   : > { %v1057_v59 = vmul.f32 %v1040_v21, %v2465_v44  ;;  %v1058_v62 = vmul.f32 %v1040_v21, %v2469_v45  ;;  %v1059_v32 = vmul.f32 %v1045_v27, %v2473_v46  ;;  %v1060_v61 = vmul.f32 %v1045_v27, %v2477_v49  ;;  %v2803_v21 = vld [vmem:[#allocation27_spill] sm:$0xff]  ;;  %v2804_v27 = vld [vmem:[#allocation6_spill] sm:$0xff] }
 0x31d   : > { %v1187_v43 = vadd.f32 %v1179_v8, %v1105_v28  ;;  %v1188_v10 = vadd.f32 %v1180_v63, %v1106_v56  ;;  %v1189_v13 = vadd.f32 %v1181_v5, %v1107_v16  ;;  %v1190_v54 = vadd.f32 %v1182_v52, %v1108_v57  ;;  %v2802_v5 = vld [vmem:[#allocation8_spill] sm:$0xff]  ;;  %p1762_p13 = pneg %p1761_p12 }
 0x31e   : > { %v1065_v6 = vadd.f32 %v1057_v59, %v2516_v7  ;;  %v1066_v0 = vadd.f32 %v1058_v62, %v2519_v18  ;;  %v1067_v34 = vadd.f32 %v1059_v32, %v2522_v37  ;;  %v1068_v29 = vadd.f32 %v1060_v61, %v2525_v20  ;;  %v2805_v59 = vld [vmem:[#allocation28_spill] sm:$0xff]  ;;  %v2806_v62 = vld [vmem:[#allocation7_spill] sm:$0xff]  ;;  %v2807_v32 = vld [vmem:[#allocation29_spill] sm:$0xff] }
 0x31f   : > { %v1257_v44 = vmul.f32 %v1240_v41, %v2534_v33  ;;  %v1258_v45 = vmul.f32 %v1240_v41, %v2537_v3  ;;  %v1259_v46 = vmul.f32 %v1245_v31, %v2540_v30  ;;  %v1260_v49 = vmul.f32 %v1245_v31, %v2543_v42  ;;  %v1250_v36 = vpop.permute.xlu1 %1249  ;;  %v1255_v23 = vpop.permute.xlu0 %1254  ;;  %p1769_p3 = pnand %p1768_p2, %p1762_p13 }
 0x320   : > { %v1101_v50 = vadd.f32 %v1093_v11, %v1065_v6  ;;  %v1102_v39 = vadd.f32 %v1094_v47, %v1066_v0  ;;  %v1103_v2 = vadd.f32 %v1095_v35, %v1067_v34  ;;  %v1104_v7 = vadd.f32 %v1096_v51, %v1068_v29 }
 0x321   : > { %v1261_v18 = vmul.f32 %v1250_v36, %v2552_v14  ;;  %v1262_v37 = vmul.f32 %v1250_v36, %v2555_v60  ;;  %v1263_v20 = vmul.f32 %v1255_v23, %v2558_v24  ;;  %v1264_v33 = vmul.f32 %v1255_v23, %v2561_v58 }
 0x322   : > { %v1183_v38 = vadd.f32 %v1175_v17, %v1101_v50  ;;  %v1184_v3 = vadd.f32 %v1176_v22, %v1102_v39  ;;  %v1185_v41 = vadd.f32 %v1177_v15, %v1103_v2  ;;  %v1186_v30 = vadd.f32 %v1178_v48, %v1104_v7  ;;  %v2800_v22 = vld [vmem:[#allocation23_spill] sm:$0xff]  ;;  %v2801_v48 = vld [vmem:[#allocation24_spill] sm:$0xff] }
 0x323   : > { %v1269_v53 = vadd.f32 %v1261_v18, %v1187_v43  ;;  %v1270_v42 = vadd.f32 %v1262_v37, %v1188_v10  ;;  %v1271_v31 = vadd.f32 %v1263_v20, %v1189_v13  ;;  %v1272_v25 = vadd.f32 %v1264_v33, %v1190_v54  ;;  %v1322_v11 = vpop.permute.xlu1 %1321  ;;  %v1327_v47 = vpop.permute.xlu0 %1326  ;;  %v2808_v43 = vld [vmem:[#allocation30_spill] sm:$0xff]  ;;  %v2809_v37 = vld [vmem:[#allocation25_spill] sm:$0xff] }
 0x324   : > { %v1265_v35 = vadd.f32 %v1257_v44, %v1183_v38  ;;  %v1266_v51 = vadd.f32 %v1258_v45, %v1184_v3  ;;  %v1339_v14 = vmul.f32 %v1322_v11, %v2565_v55  ;;  %v1340_v60 = vmul.f32 %v1322_v11, %v2569_v40  ;;  %v2811_v3 = vld [vmem:[#allocation26_spill] sm:$0xff] }
 0x325   : > { %v1267_v24 = vadd.f32 %v1259_v46, %v1185_v41  ;;  %v1268_v9 = vadd.f32 %v1260_v49, %v1186_v30  ;;  %v1341_v58 = vmul.f32 %v1327_v47, %v2573_v1  ;;  %v1342_v17 = vmul.f32 %v1327_v47, %v2577_v12 }
 0x326   : > { %v1317_v15 = vmul.f32 %v2507_v4, %v2800_v22  ;;  %v1318_v28 = vmul.f32 %v2510_v26, %v2801_v48  ;;  %v1347_v56 = vadd.f32 %v1339_v14, %v1265_v35  ;;  %v1348_v16 = vadd.f32 %v1340_v60, %v1266_v51 }
 0x327   : > { %v1349_v57 = vadd.f32 %v1341_v58, %v1267_v24  ;;  %v1350_v8 = vadd.f32 %v1342_v17, %v1268_v9  ;;  %v1332_v55 = vpop.permute.xlu1 %1331  ;;  %v1337_v63 = vpop.permute.xlu0 %1336  ;;  %v1393_v4 = vmul.f32 %v2804_v27, %v2803_v21  ;;  %v1394_v26 = vmul.f32 %v2806_v62, %v2805_v59 }
 0x328   : > { %v1343_v40 = vmul.f32 %v1332_v55, %v2581_v19  ;;  %v1344_v1 = vmul.f32 %v1332_v55, %v2802_v5  ;;  %v1345_v52 = vmul.f32 %v1337_v63, %v1317_v15  ;;  %v1346_v12 = vmul.f32 %v1337_v63, %v1318_v28 }
 0x329   : > { %v1395_v61 = vmul.f32 %v2804_v27, %v2807_v32  ;;  %v1396_v10 = vmul.f32 %v2806_v62, %v2808_v43 }
 0x32a   : > { %v1351_v13 = vadd.f32 %v1343_v40, %v1269_v53  ;;  %v1352_v54 = vadd.f32 %v1344_v1, %v1270_v42  ;;  %v1353_v6 = vadd.f32 %v1345_v52, %v1271_v31  ;;  %v1354_v19 = vadd.f32 %v1346_v12, %v1272_v25 }
 0x32b   : > { %v1404_v0 = vpop.permute.xlu1 %1403  ;;  %v1409_v34 = vpop.permute.xlu0 %1408 }
 0x32c   : > { %v1421_v29 = vmul.f32 %v1404_v0, %v1393_v4  ;;  %v1422_v44 = vmul.f32 %v1404_v0, %v1394_v26  ;;  %v1423_v45 = vmul.f32 %v1409_v34, %v1395_v61  ;;  %v1424_v46 = vmul.f32 %v1409_v34, %v1396_v10 }
 0x32e   : > { %v1429_v49 = vadd.f32 %v1421_v29, %v1347_v56  ;;  %v1430_v36 = vadd.f32 %v1422_v44, %v1348_v16  ;;  %v1431_v23 = vadd.f32 %v1423_v45, %v1349_v57  ;;  %v1432_v50 = vadd.f32 %v1424_v46, %v1350_v8 }
 0x32f   : > { %v1414_v39 = vpop.permute.xlu1 %1413  ;;  %v1419_v2 = vpop.permute.xlu0 %1418 }
 0x330   : > { %1437 = vst [vmem:[%s244_s29] sm:$0xff] %v1429_v49  ;;  %1438 = vst [vmem:[%s244_s29 + $0x8] sm:$0xff] %v1430_v36 }
 0x331   : > { %1439 = vst [vmem:[%s244_s29 + $0x10] sm:$0xff] %v1431_v23  ;;  %1440 = vst [vmem:[%s244_s29 + $0x18] sm:$0xff] %v1432_v50 }
 0x333   : > { %v1368_v7 = vpop.permute.xlu1 %1367  ;;  %v1370_v18 = vpop.permute.xlu0 %1369 }
 0x334   : > { %v1374_v33 = vsel %vm1371_vm10, %v2809_v37, %v1368_v7  ;;  %v1378_v38 = vsel %vm1371_vm10, %v1368_v7, %v2809_v37  ;;  %v1375_v41 = vsel %vm1371_vm10, %v2811_v3, %v1370_v18  ;;  %v1379_v30 = vsel %vm1371_vm10, %v1370_v18, %v2811_v3 }
 0x335   : > { %v1397_v53 = vmul.f32 %v2804_v27, %v1374_v33  ;;  %v1398_v42 = vmul.f32 %v2806_v62, %v1378_v38  ;;  %v1399_v31 = vmul.f32 %v2804_v27, %v1375_v41  ;;  %v1400_v25 = vmul.f32 %v2806_v62, %v1379_v30 }
 0x337   : > { %v1425_v11 = vmul.f32 %v1414_v39, %v1397_v53  ;;  %v1426_v47 = vmul.f32 %v1414_v39, %v1398_v42  ;;  %v1427_v35 = vmul.f32 %v1419_v2, %v1399_v31  ;;  %v1428_v51 = vmul.f32 %v1419_v2, %v1400_v25 }
 0x339   : > { %v1433_v14 = vadd.f32 %v1425_v11, %v1351_v13  ;;  %v1434_v60 = vadd.f32 %v1426_v47, %v1352_v54  ;;  %v1435_v24 = vadd.f32 %v1427_v35, %v1353_v6  ;;  %v1436_v9 = vadd.f32 %v1428_v51, %v1354_v19 }
 0x33b   : > { %1441 = vst [vmem:[%s244_s29 + $0x20] sm:$0xff] %v1433_v14  ;;  %1442 = vst [vmem:[%s244_s29 + $0x28] sm:$0xff] %v1434_v60 }
 0x33c   : > { %1443 = vst [vmem:[%s244_s29 + $0x30] sm:$0xff] %v1435_v24  ;;  %1444 = vst [vmem:[%s244_s29 + $0x38] sm:$0xff] %v1436_v9 }
 0x33d   : > { %1772 = shalt.err (!%p1769_p3)
}
 0x33e   : > { %s1773_s20 = scalar_lea.hbm %s2680_s14, 1024  ;;  %s1777_s13 = scalar_lea.hbm %s2733_s6, 2048 }
 0x33f   : > { %p1774_p4 = scmp.ne.s32.totalorder %s2680_s14, %s1773_s20  ;;  %p1778_p9 = scmp.lt.u32.totalorder %s2680_s14, %s2733_s6 }
 0x340   : > { %p1779_p10 = scmp.lt.u32.totalorder %s1777_s13, %s1773_s20  ;;  %p1781_p12 = scmp.lt.u32.totalorder %s1773_s20, %s2680_s14 }
 0x341   : > { %p1775_p7 = pnand %p1774_p4, %p1911_p5 }
 0x342   : > { %p1780_p11 = por %p1779_p10, %p1778_p9 }
 0x343   : > { %p1776_p8 = pneg %p1775_p7 }
 0x344   : > { %p1782_p13 = por %p1781_p12, %p1780_p11 }
 0x346   : > { %p1783_p0 = pnand %p1782_p13, %p1776_p8 }
 0x348   : > { %1786 = shalt.err (!%p1783_p0)
}
 0x349   : > { %s1836_s9 = smov 256   ;;  %s1837_s11 = smov 16  }
 0x34a   : > { %1696 = dma.vmem_to_hbm [thread:$0]  (%p1911_p5), %s2682_s10, 1024, %s2680_s14, %s2686_s25, %s1836_s9, %s1836_s9, %s1837_s11  }
 0x34b PF: > { %p1702_p1 = scmp.ge.s32.totalorder %s1821_s24, 2  ;;  %s1474_s12 = sand.u32 1, %s1809_s21  }
 0x34c   : > { %s1475_s15 = scalar_lea.sflag [#allocation3], %s1474_s12 }
 0x34d   : > { %p1699_p2 = pnand %p1702_p1, %p1915_p6 }
 0x34f   : > { %1804 = dma.done.wait (!%p1699_p2), %s1475_s15, 1024  }
 0x350   : > { %1806 = vsyncadd (!%p1699_p2), %s1475_s15, 4294966272  ;;  %p16_p3 = scmp.ge.s32.totalorder %s1898_s27, 4   ;;  %s2812_s21 = smov %s1813_s22 }
 0x351   : > { %s2813_s22 = smov %s1817_s23  ;;  %s2814_s23 = smov %s1909_s30 }
 0x352   : > { %s2815_s24 = smov %s1898_s27  ;;  %18 = sbr.rel (!%p16_p3) target bundleno = 3 (0x3), region = 86 }
 0x359   :  { %1480 = vsyncpa [#allocation3], 1 }
 0x35a   :  { %1482 = vsyncpa [#allocation3 + $0x1], 1 }

</bundles_post_ra>
